<compile_context>
chip_gen: v7x
topology: tpu7x:2x2x1
jax: 0.10.0
libtpu: 0.0.40
codegen_flags: <defaults>
</compile_context>

<pallas_src>
import math
import functools

import jax
import jax.numpy as jnp
from jax.experimental import pallas as pl
from jax.experimental.pallas import tpu as pltpu


# ----------------------------- kernel -------------------------------------- #

def _layer_norm(x, gamma, beta, eps=1e-5):
    mean = jnp.mean(x, axis=-1, keepdims=True)
    var = jnp.mean((x - mean) ** 2, axis=-1, keepdims=True)
    return (x - mean) * jax.lax.rsqrt(var + eps) * gamma + beta


def encoder_kernel(x_ref, wqkv_ref, bqkv_ref, wo_ref, bo_ref,
                   ln1w_ref, ln1b_ref, w1_ref, b1_ref,
                   w2_ref, b2_ref, ln2w_ref, ln2b_ref,
                   out_ref, act_ref, *, n_head):
    """Grid = (batch_tile, layer).  One nn.TransformerEncoderLayer per (b, l) step
    (norm_first=False, ReLU FFN, eval-mode dropout == identity).  TB batch rows are
    processed per step; the activation stays resident in `act_ref` (VMEM, f32) across
    the layer axis."""
    l = pl.program_id(1)
    n_layers = pl.num_programs(1)

    tb, n, d = x_ref.shape                 # (TB, N, D) block
    m = tb * n
    dh = d // n_head
    cdt = wqkv_ref.dtype                   # MXU input dtype (bf16 by default)

    # Layer 0: load this batch tile into the resident activation.
    @pl.when(l == 0)
    def _():
        act_ref[...] = x_ref[...].reshape(m, d).astype(jnp.float32)

    x = act_ref[...]                        # [M, D] f32

    # --- self attention ------------------------------------------------------
    xc = x.astype(cdt)
    qkv = jnp.dot(xc, wqkv_ref[...], preferred_element_type=jnp.float32) + bqkv_ref[...]
    # 1/sqrt(dh) is already folded into the Q columns of wqkv/bqkv (host side).
    q = qkv[:, 0:d]
    k = qkv[:, d:2 * d]
    v = qkv[:, 2 * d:3 * d]

    # Out-projection fused per head:  attn = sum_h (softmax(q_h k_h^T) v_h) Wo_h  (+ bo once)
    # Static head loop with static lane slices (dynamic minor-dim slicing is avoided on
    # purpose); per-head [TB, N, N] tiles die each iteration via the serial accumulation.
    attn = jnp.zeros((m, d), jnp.float32)
    for h in range(n_head):
        sl = slice(h * dh, (h + 1) * dh)
        qh = q[:, sl].astype(cdt).reshape(tb, n, dh)
        kh = k[:, sl].astype(cdt).reshape(tb, n, dh)
        vh = v[:, sl].astype(cdt).reshape(tb, n, dh)
        s = jnp.einsum('bqe,bke->bqk', qh, kh,
                       preferred_element_type=jnp.float32)              # [TB, N, N]
        s = s - jnp.max(s, axis=-1, keepdims=True)
        p = jnp.exp(s)
        p = p * pl.reciprocal(jnp.sum(p, axis=-1, keepdims=True), approx=True)
        ctx = jnp.einsum('bqk,bke->bqe', p.astype(cdt), vh,
                         preferred_element_type=jnp.float32)             # [TB, N, dh]
        attn = attn + jnp.dot(ctx.reshape(m, dh).astype(cdt), wo_ref[sl, :],
                              preferred_element_type=jnp.float32)
    attn = attn + bo_ref[...]

    # dropout is identity in eval mode
    x1 = _layer_norm(x + attn, ln1w_ref[...], ln1b_ref[...])

    # --- feed-forward ---------------------------------------------------------
    h1 = jnp.dot(x1.astype(cdt), w1_ref[...], preferred_element_type=jnp.float32) + b1_ref[...]
    h1 = jnp.maximum(h1, 0.0)                                            # ReLU
    ff = jnp.dot(h1.astype(cdt), w2_ref[...], preferred_element_type=jnp.float32) + b2_ref[...]

    x2 = _layer_norm(x1 + ff, ln2w_ref[...], ln2b_ref[...])
    act_ref[...] = x2                        # carry to next layer

    @pl.when(l == n_layers - 1)
    def _():
        out_ref[...] = x2.reshape(out_ref.shape).astype(out_ref.dtype)


# ----------------------------- wrapper -------------------------------------- #

def _pick_batch_tile(batch, target=4):
    """Largest divisor of `batch` <= target, preferring >= 2 parallel grid steps (v7x)."""
    candidates = [t for t in range(1, min(batch, target) + 1) if batch % t == 0]
    good = [t for t in candidates if batch // t >= 2]
    return max(good) if good else max(candidates)


def _stack_params(layer_params, n_head, matmul_dtype):
    """Stack per-layer params along a leading L axis.  Matmul weights are cast to
    `matmul_dtype`; the attention scale 1/sqrt(dh) is folded into the Q columns."""
    mat_keys = {"wqkv_t", "wo_t", "w1_t", "w2_t"}
    d = layer_params[0]["wqkv_t"].shape[0]
    dh = d // n_head
    scale = 1.0 / math.sqrt(dh)
    out = {}
    for key in layer_params[0]:
        v = jnp.stack([p[key] for p in layer_params], axis=0)
        if key in ("wqkv_t", "bqkv"):
            v = v.at[..., :d].multiply(scale)          # fold q-scale (free, host side)
        if key in mat_keys:
            v = v.astype(matmul_dtype)
        out[key] = v
    return out


def transformer_seq_encoder(x, layer_params, n_head, *,
                            matmul_dtype=jnp.bfloat16, batch_tile=None):
    """Full module forward: n_layers post-norm encoder layers, then flatten(1, 2).

    x: [B, N, D]  ->  [B, N*D]
    """
    B, N, D = x.shape
    L = len(layer_params)
    H = layer_params[0]["w1_t"].shape[-1]
    TB = batch_tile if batch_tile is not None else _pick_batch_tile(B)
    assert B % TB == 0, (B, TB)
    p = _stack_params(layer_params, n_head, matmul_dtype)

    def wspec(shape):
        # Per-layer weight tile; block index follows the layer grid axis.
        return pl.BlockSpec((None,) + shape, lambda b, l: (l,) + (0,) * len(shape))

    # ---- generation-aware VMEM budget (computed from actual block sizes) ----
    itm = jnp.dtype(matmul_dtype).itemsize
    w_block = (D * 3 * D + D * D + D * H + H * D) * itm + (3 * D + 2 * D + H + 4 * D) * 4
    io_block = TB * N * D * x.dtype.itemsize
    scratch = TB * N * D * 4
    interm = (TB * N * 3 * D + 3 * TB * N * D + TB * N * H + 2 * TB * N * N) * 4
    need = 2 * w_block + 4 * io_block + scratch + interm
    try:
        cap = getattr(pltpu.get_tpu_info(), "vmem_capacity_bytes", 64 << 20)
    except Exception:  # pragma: no cover - conservative fallback (v7x-sized)
        cap = 64 << 20
    vmem_limit = int(min(0.9 * cap, max(32 << 20, 1.5 * need + (4 << 20))))

    # Advisory cost estimate for the fused kernel (helps XLA scheduling).
    flops_per_row = 2 * N * D * (3 * D) + 4 * N * N * D + 2 * N * D * D + 4 * N * D * H
    cost = pl.CostEstimate(
        flops=int(B * L * flops_per_row),
        transcendentals=int(B * L * (n_head * N * N + 2 * N)),
        bytes_accessed=int(2 * B * N * D * 4 + (B // TB) * L * w_block),
    )

    kernel = functools.partial(encoder_kernel, n_head=n_head)
    out = pl.pallas_call(
        kernel,
        out_shape=jax.ShapeDtypeStruct((B, N, D), x.dtype),
        grid_spec=pltpu.PrefetchScalarGridSpec(
            num_scalar_prefetch=0,
            grid=(B // TB, L),                           # batch tile (parallel), layer (arbitrary)
            in_specs=[
                pl.BlockSpec((TB, N, D), lambda b, l: (b, 0, 0)),     # x (TB batch rows)
                wspec((D, 3 * D)), wspec((1, 3 * D)),                 # in_proj W^T, bias
                wspec((D, D)), wspec((1, D)),                         # out_proj W^T, bias
                wspec((1, D)), wspec((1, D)),                         # norm1 gamma / beta
                wspec((D, H)), wspec((1, H)),                         # linear1 W^T, bias
                wspec((H, D)), wspec((1, D)),                         # linear2 W^T, bias
                wspec((1, D)), wspec((1, D)),                         # norm2 gamma / beta
            ],
            out_specs=pl.BlockSpec((TB, N, D), lambda b, l: (b, 0, 0)),
            scratch_shapes=[pltpu.VMEM((TB * N, D), jnp.float32)],    # resident activation
        ),
        compiler_params=pltpu.CompilerParams(
            dimension_semantics=("parallel", "arbitrary"),
            vmem_limit_bytes=vmem_limit,
        ),
        cost_estimate=cost,
    )(x, p["wqkv_t"], p["bqkv"], p["wo_t"], p["bo"],
      p["ln1_w"], p["ln1_b"], p["w1_t"], p["b1"],
      p["w2_t"], p["b2"], p["ln2_w"], p["ln2_b"])

    # flatten(1, 2): layout-preserving (free) reshape at real ViT dims (D >= 128).
    return out.reshape(B, N * D)


# ----------------------------- reference (pure JAX, f32) --------------------- #

def _ref_layer(x, p, n_head):
    B, N, D = x.shape
    dh = D // n_head
    qkv = x @ p["wqkv_t"] + p["bqkv"]
    q, k, v = jnp.split(qkv, 3, axis=-1)
    sh = lambda t: t.reshape(B, N, n_head, dh).transpose(0, 2, 1, 3)
    q, k, v = sh(q), sh(k), sh(v)
    s = jnp.einsum("bhnd,bhmd->bhnm", q, k) / math.sqrt(dh)
    a = jax.nn.softmax(s, axis=-1)
    attn = jnp.einsum("bhnm,bhmd->bhnd", a, v).transpose(0, 2, 1, 3).reshape(B, N, D)
    attn = attn @ p["wo_t"] + p["bo"]
    x1 = _layer_norm(x + attn, p["ln1_w"], p["ln1_b"])
    ff = jnp.maximum(x1 @ p["w1_t"] + p["b1"], 0.0) @ p["w2_t"] + p["b2"]
    return _layer_norm(x1 + ff, p["ln2_w"], p["ln2_b"])


def _ref_forward(x, layer_params, n_head):
    for p in layer_params:
        x = _ref_layer(x, p, n_head)
    return x.reshape(x.shape[0], -1)


# ----------------------------- params & main --------------------------------- #

def init_layer_params(key, d_model, hidden_dim):
    ks = jax.random.split(key, 6)
    s = 0.05
    return {
        # stored pre-transposed so the kernel does plain x @ W
        "wqkv_t": jax.random.normal(ks[0], (d_model, 3 * d_model), jnp.float32) * s,
        "bqkv":   jax.random.normal(ks[1], (1, 3 * d_model), jnp.float32) * s,
        "wo_t":   jax.random.normal(ks[2], (d_model, d_model), jnp.float32) * s,
        "bo":     jax.random.normal(ks[3], (1, d_model), jnp.float32) * s,
        "ln1_w":  jnp.ones((1, d_model), jnp.float32),
        "ln1_b":  jnp.zeros((1, d_model), jnp.float32),
        "w1_t":   jax.random.normal(ks[4], (d_model, hidden_dim), jnp.float32) * s,
        "b1":     jnp.zeros((1, hidden_dim), jnp.float32),
        "w2_t":   jax.random.normal(ks[5], (hidden_dim, d_model), jnp.float32) * s,
        "b2":     jnp.zeros((1, d_model), jnp.float32),
        "ln2_w":  jnp.ones((1, d_model), jnp.float32),
        "ln2_b":  jnp.zeros((1, d_model), jnp.float32),
    }


if __name__ == "__main__":
    # Small shapes consistent with forward(): x is [B, N, D] (batch_first).
    B, N, D = 2, 16, 32                  # max_len = N = 16 (grid_size 4), input_dim = D = 32
    n_head, hidden_dim, n_layers = 4, 64, 2

    key = jax.random.PRNGKey(0)
    kx, *kls = jax.random.split(key, 1 + n_layers)
    x = jax.random.normal(kx, (B, N, D), jnp.float32)
    layer_params = [init_layer_params(k, D, hidden_dim) for k in kls]

    out = transformer_seq_encoder(x, layer_params, n_head)   # bf16 MXU inputs by default
    out = jax.block_until_ready(out)
    assert out.shape == (B, N * D), out.shape

    ref = _ref_forward(x, layer_params, n_head)               # f32 reference
    err = jnp.max(jnp.abs(out - ref))
    # bf16 matmul inputs + approx reciprocal => loosened tolerance vs the f32 reference.
    assert jnp.allclose(out, ref, atol=5e-2, rtol=5e-2), f"max err {err}"

    print("KERNEL_OK")
</pallas_src>

<mosaic_0001>
module attributes {stable_mosaic.version = 11 : i64} {
  func.func @encoder_kernel(%arg0: i32, %arg1: i32, %arg2: memref<1x16x32xf32, #tpu.memory_space<vmem>>, %arg3: memref<1x32x96xbf16, #tpu.memory_space<vmem>>, %arg4: memref<1x1x96xf32, #tpu.memory_space<vmem>>, %arg5: memref<1x32x32xbf16, #tpu.memory_space<vmem>>, %arg6: memref<1x1x32xf32, #tpu.memory_space<vmem>>, %arg7: memref<1x1x32xf32, #tpu.memory_space<vmem>>, %arg8: memref<1x1x32xf32, #tpu.memory_space<vmem>>, %arg9: memref<1x32x64xbf16, #tpu.memory_space<vmem>>, %arg10: memref<1x1x64xf32, #tpu.memory_space<vmem>>, %arg11: memref<1x64x32xbf16, #tpu.memory_space<vmem>>, %arg12: memref<1x1x32xf32, #tpu.memory_space<vmem>>, %arg13: memref<1x1x32xf32, #tpu.memory_space<vmem>>, %arg14: memref<1x1x32xf32, #tpu.memory_space<vmem>>, %arg15: memref<1x16x32xf32, #tpu.memory_space<vmem>>, %arg16: memref<16x32xf32, #tpu.memory_space<vmem>>) attributes {dimension_semantics = [#tpu.dimension_semantics<parallel>, #tpu.dimension_semantics<arbitrary>], iteration_bounds = array<i64: 2, 2>, scalar_prefetch = 0 : i64, scratch_operands = 1 : i64, tpu.core_type = #tpu.core_type<tc>, window_params = [{transform_indices = @transform_0, window_bounds = array<i64: 1, 16, 32>}, {transform_indices = @transform_1, window_bounds = array<i64: 1, 32, 96>}, {transform_indices = @transform_2, window_bounds = array<i64: 1, 1, 96>}, {transform_indices = @transform_3, window_bounds = array<i64: 1, 32, 32>}, {transform_indices = @transform_4, window_bounds = array<i64: 1, 1, 32>}, {transform_indices = @transform_5, window_bounds = array<i64: 1, 1, 32>}, {transform_indices = @transform_6, window_bounds = array<i64: 1, 1, 32>}, {transform_indices = @transform_7, window_bounds = array<i64: 1, 32, 64>}, {transform_indices = @transform_8, window_bounds = array<i64: 1, 1, 64>}, {transform_indices = @transform_9, window_bounds = array<i64: 1, 64, 32>}, {transform_indices = @transform_10, window_bounds = array<i64: 1, 1, 32>}, {transform_indices = @transform_11, window_bounds = array<i64: 1, 1, 32>}, {transform_indices = @transform_12, window_bounds = array<i64: 1, 1, 32>}, {transform_indices = @transform_13, window_bounds = array<i64: 1, 16, 32>}]} {
    %c0_i32 = arith.constant 0 : i32
    %0 = arith.cmpi eq, %arg1, %c0_i32 : i32
    %1 = arith.extui %0 : i1 to i32
    %c0_i32_0 = arith.constant 0 : i32
    %2 = arith.cmpi ne, %1, %c0_i32_0 : i32
    scf.if %2 {
      %c0_81 = arith.constant 0 : index
      %c0_82 = arith.constant 0 : index
      %c0_83 = arith.constant 0 : index
      %208 = vector.load %arg2[%c0_81, %c0_82, %c0_83] : memref<1x16x32xf32, #tpu.memory_space<vmem>>, vector<1x16x32xf32>
      %209 = vector.shape_cast %208 : vector<1x16x32xf32> to vector<16x32xf32>
      %c0_84 = arith.constant 0 : index
      %c0_85 = arith.constant 0 : index
      %210 = vector.load %arg16[%c0_84, %c0_85] : memref<16x32xf32, #tpu.memory_space<vmem>>, vector<16x32xf32>
      tpu.vector_store %arg16[%c0_84, %c0_85], %209 {strides = array<i32>} : memref<16x32xf32, #tpu.memory_space<vmem>>, vector<16x32xf32>,
    } else {
    }
    %c0 = arith.constant 0 : index
    %c0_1 = arith.constant 0 : index
    %3 = vector.load %arg16[%c0, %c0_1] : memref<16x32xf32, #tpu.memory_space<vmem>>, vector<16x32xf32>
    %4 = arith.truncf %3 : vector<16x32xf32> to vector<16x32xbf16>
    %c0_2 = arith.constant 0 : index
    %c0_3 = arith.constant 0 : index
    %c0_4 = arith.constant 0 : index
    %5 = vector.load %arg3[%c0_2, %c0_3, %c0_4] : memref<1x32x96xbf16, #tpu.memory_space<vmem>>, vector<1x32x96xbf16>
    %6 = vector.shape_cast %5 : vector<1x32x96xbf16> to vector<32x96xbf16>
    %cst = arith.constant dense<0.000000e+00> : vector<16x96xf32>
    %7 = tpu.matmul %4, %6, %cst {dimension_numbers = #tpu.dot_dimension_numbers<[1], [0], [0], [1], [0, 0, 1, 1], [], []>} : vector<16x32xbf16>, vector<32x96xbf16>, vector<16x96xf32> -> vector<16x96xf32>
    %c0_5 = arith.constant 0 : index
    %c0_6 = arith.constant 0 : index
    %c0_7 = arith.constant 0 : index
    %8 = vector.load %arg4[%c0_5, %c0_6, %c0_7] : memref<1x1x96xf32, #tpu.memory_space<vmem>>, vector<1x1x96xf32>
    %9 = vector.shape_cast %8 : vector<1x1x96xf32> to vector<1x96xf32>
    %10 = vector.broadcast %9 : vector<1x96xf32> to vector<16x96xf32>
    %11 = arith.addf %7, %10 : vector<16x96xf32>
    %12 = vector.extract_strided_slice %11 {offsets = [0, 0], sizes = [16, 32], strides = [1, 1]} : vector<16x96xf32> to vector<16x32xf32>
    %13 = vector.extract_strided_slice %11 {offsets = [0, 32], sizes = [16, 32], strides = [1, 1]} : vector<16x96xf32> to vector<16x32xf32>
    %14 = vector.extract_strided_slice %11 {offsets = [0, 64], sizes = [16, 32], strides = [1, 1]} : vector<16x96xf32> to vector<16x32xf32>
    %cst_8 = arith.constant 0.000000e+00 : f32
    %15 = vector.broadcast %cst_8 : f32 to vector<16x32xf32>
    %16 = vector.extract_strided_slice %12 {offsets = [0, 0], sizes = [16, 8], strides = [1, 1]} : vector<16x32xf32> to vector<16x8xf32>
    %17 = arith.truncf %16 : vector<16x8xf32> to vector<16x8xbf16>
    %18 = vector.shape_cast %17 : vector<16x8xbf16> to vector<1x16x8xbf16>
    %19 = vector.extract_strided_slice %13 {offsets = [0, 0], sizes = [16, 8], strides = [1, 1]} : vector<16x32xf32> to vector<16x8xf32>
    %20 = arith.truncf %19 : vector<16x8xf32> to vector<16x8xbf16>
    %21 = vector.shape_cast %20 : vector<16x8xbf16> to vector<1x16x8xbf16>
    %22 = vector.extract_strided_slice %14 {offsets = [0, 0], sizes = [16, 8], strides = [1, 1]} : vector<16x32xf32> to vector<16x8xf32>
    %23 = arith.truncf %22 : vector<16x8xf32> to vector<16x8xbf16>
    %24 = vector.shape_cast %23 : vector<16x8xbf16> to vector<1x16x8xbf16>
    "tpu.trace_start"() <{level = 10 : i32, message = "bqe,bke->bqk"}> : () -> ()
    %cst_9 = arith.constant dense<0.000000e+00> : vector<1x16x16xf32>
    %25 = tpu.matmul %18, %21, %cst_9 {dimension_numbers = #tpu.dot_dimension_numbers<[2], [2], [1], [1], [0, 0, 0, 1, 1, 1], [0], [0]>} : vector<1x16x8xbf16>, vector<1x16x8xbf16>, vector<1x16x16xf32> -> vector<1x16x16xf32>
    "tpu.trace_stop"() : () -> ()
    %cst_10 = arith.constant dense<0xFF800000> : vector<1x16xf32>
    %26 = vector.multi_reduction <maximumf>, %25, %cst_10 [2] : vector<1x16x16xf32> to vector<1x16xf32>
    %27 = vector.shape_cast %26 : vector<1x16xf32> to vector<1x16x1xf32>
    %28 = vector.broadcast %27 : vector<1x16x1xf32> to vector<1x16x16xf32>
    %29 = arith.subf %25, %28 : vector<1x16x16xf32>
    %30 = math.exp %29 : vector<1x16x16xf32>
    %cst_11 = arith.constant dense<0.000000e+00> : vector<1x16xf32>
    %31 = vector.multi_reduction <add>, %30, %cst_11 [2] : vector<1x16x16xf32> to vector<1x16xf32>
    %32 = vector.shape_cast %31 : vector<1x16xf32> to vector<1x16x1xf32>
    %33 = tpu.reciprocal %32 {approx = true} : vector<1x16x1xf32> -> vector<1x16x1xf32>
    %34 = vector.broadcast %33 : vector<1x16x1xf32> to vector<1x16x16xf32>
    %35 = arith.mulf %30, %34 : vector<1x16x16xf32>
    %36 = arith.truncf %35 : vector<1x16x16xf32> to vector<1x16x16xbf16>
    "tpu.trace_start"() <{level = 10 : i32, message = "bqk,bke->bqe"}> : () -> ()
    %cst_12 = arith.constant dense<0.000000e+00> : vector<1x16x8xf32>
    %37 = tpu.matmul %36, %24, %cst_12 {dimension_numbers = #tpu.dot_dimension_numbers<[2], [1], [1], [2], [0, 0, 0, 1, 1, 2], [0], [0]>} : vector<1x16x16xbf16>, vector<1x16x8xbf16>, vector<1x16x8xf32> -> vector<1x16x8xf32>
    "tpu.trace_stop"() : () -> ()
    %38 = vector.shape_cast %37 : vector<1x16x8xf32> to vector<16x8xf32>
    %39 = arith.truncf %38 : vector<16x8xf32> to vector<16x8xbf16>
    %c0_13 = arith.constant 0 : index
    %c0_14 = arith.constant 0 : index
    %c0_15 = arith.constant 0 : index
    %40 = vector.load %arg5[%c0_13, %c0_14, %c0_15] : memref<1x32x32xbf16, #tpu.memory_space<vmem>>, vector<1x8x32xbf16>
    %41 = vector.shape_cast %40 : vector<1x8x32xbf16> to vector<8x32xbf16>
    %cst_16 = arith.constant dense<0.000000e+00> : vector<16x32xf32>
    %42 = tpu.matmul %39, %41, %cst_16 {dimension_numbers = #tpu.dot_dimension_numbers<[1], [0], [0], [1], [0, 0, 1, 1], [], []>} : vector<16x8xbf16>, vector<8x32xbf16>, vector<16x32xf32> -> vector<16x32xf32>
    %43 = arith.addf %15, %42 : vector<16x32xf32>
    %44 = vector.extract_strided_slice %12 {offsets = [0, 8], sizes = [16, 8], strides = [1, 1]} : vector<16x32xf32> to vector<16x8xf32>
    %45 = arith.truncf %44 : vector<16x8xf32> to vector<16x8xbf16>
    %46 = vector.shape_cast %45 : vector<16x8xbf16> to vector<1x16x8xbf16>
    %47 = vector.extract_strided_slice %13 {offsets = [0, 8], sizes = [16, 8], strides = [1, 1]} : vector<16x32xf32> to vector<16x8xf32>
    %48 = arith.truncf %47 : vector<16x8xf32> to vector<16x8xbf16>
    %49 = vector.shape_cast %48 : vector<16x8xbf16> to vector<1x16x8xbf16>
    %50 = vector.extract_strided_slice %14 {offsets = [0, 8], sizes = [16, 8], strides = [1, 1]} : vector<16x32xf32> to vector<16x8xf32>
    %51 = arith.truncf %50 : vector<16x8xf32> to vector<16x8xbf16>
    %52 = vector.shape_cast %51 : vector<16x8xbf16> to vector<1x16x8xbf16>
    "tpu.trace_start"() <{level = 10 : i32, message = "bqe,bke->bqk"}> : () -> ()
    %cst_17 = arith.constant dense<0.000000e+00> : vector<1x16x16xf32>
    %53 = tpu.matmul %46, %49, %cst_17 {dimension_numbers = #tpu.dot_dimension_numbers<[2], [2], [1], [1], [0, 0, 0, 1, 1, 1], [0], [0]>} : vector<1x16x8xbf16>, vector<1x16x8xbf16>, vector<1x16x16xf32> -> vector<1x16x16xf32>
    "tpu.trace_stop"() : () -> ()
    %cst_18 = arith.constant dense<0xFF800000> : vector<1x16xf32>
    %54 = vector.multi_reduction <maximumf>, %53, %cst_18 [2] : vector<1x16x16xf32> to vector<1x16xf32>
    %55 = vector.shape_cast %54 : vector<1x16xf32> to vector<1x16x1xf32>
    %56 = vector.broadcast %55 : vector<1x16x1xf32> to vector<1x16x16xf32>
    %57 = arith.subf %53, %56 : vector<1x16x16xf32>
    %58 = math.exp %57 : vector<1x16x16xf32>
    %cst_19 = arith.constant dense<0.000000e+00> : vector<1x16xf32>
    %59 = vector.multi_reduction <add>, %58, %cst_19 [2] : vector<1x16x16xf32> to vector<1x16xf32>
    %60 = vector.shape_cast %59 : vector<1x16xf32> to vector<1x16x1xf32>
    %61 = tpu.reciprocal %60 {approx = true} : vector<1x16x1xf32> -> vector<1x16x1xf32>
    %62 = vector.broadcast %61 : vector<1x16x1xf32> to vector<1x16x16xf32>
    %63 = arith.mulf %58, %62 : vector<1x16x16xf32>
    %64 = arith.truncf %63 : vector<1x16x16xf32> to vector<1x16x16xbf16>
    "tpu.trace_start"() <{level = 10 : i32, message = "bqk,bke->bqe"}> : () -> ()
    %cst_20 = arith.constant dense<0.000000e+00> : vector<1x16x8xf32>
    %65 = tpu.matmul %64, %52, %cst_20 {dimension_numbers = #tpu.dot_dimension_numbers<[2], [1], [1], [2], [0, 0, 0, 1, 1, 2], [0], [0]>} : vector<1x16x16xbf16>, vector<1x16x8xbf16>, vector<1x16x8xf32> -> vector<1x16x8xf32>
    "tpu.trace_stop"() : () -> ()
    %66 = vector.shape_cast %65 : vector<1x16x8xf32> to vector<16x8xf32>
    %67 = arith.truncf %66 : vector<16x8xf32> to vector<16x8xbf16>
    %c0_21 = arith.constant 0 : index
    %c8 = arith.constant 8 : index
    %c0_22 = arith.constant 0 : index
    %68 = vector.load %arg5[%c0_21, %c8, %c0_22] : memref<1x32x32xbf16, #tpu.memory_space<vmem>>, vector<1x8x32xbf16>
    %69 = vector.shape_cast %68 : vector<1x8x32xbf16> to vector<8x32xbf16>
    %cst_23 = arith.constant dense<0.000000e+00> : vector<16x32xf32>
    %70 = tpu.matmul %67, %69, %cst_23 {dimension_numbers = #tpu.dot_dimension_numbers<[1], [0], [0], [1], [0, 0, 1, 1], [], []>} : vector<16x8xbf16>, vector<8x32xbf16>, vector<16x32xf32> -> vector<16x32xf32>
    %71 = arith.addf %43, %70 : vector<16x32xf32>
    %72 = vector.extract_strided_slice %12 {offsets = [0, 16], sizes = [16, 8], strides = [1, 1]} : vector<16x32xf32> to vector<16x8xf32>
    %73 = arith.truncf %72 : vector<16x8xf32> to vector<16x8xbf16>
    %74 = vector.shape_cast %73 : vector<16x8xbf16> to vector<1x16x8xbf16>
    %75 = vector.extract_strided_slice %13 {offsets = [0, 16], sizes = [16, 8], strides = [1, 1]} : vector<16x32xf32> to vector<16x8xf32>
    %76 = arith.truncf %75 : vector<16x8xf32> to vector<16x8xbf16>
    %77 = vector.shape_cast %76 : vector<16x8xbf16> to vector<1x16x8xbf16>
    %78 = vector.extract_strided_slice %14 {offsets = [0, 16], sizes = [16, 8], strides = [1, 1]} : vector<16x32xf32> to vector<16x8xf32>
    %79 = arith.truncf %78 : vector<16x8xf32> to vector<16x8xbf16>
    %80 = vector.shape_cast %79 : vector<16x8xbf16> to vector<1x16x8xbf16>
    "tpu.trace_start"() <{level = 10 : i32, message = "bqe,bke->bqk"}> : () -> ()
    %cst_24 = arith.constant dense<0.000000e+00> : vector<1x16x16xf32>
    %81 = tpu.matmul %74, %77, %cst_24 {dimension_numbers = #tpu.dot_dimension_numbers<[2], [2], [1], [1], [0, 0, 0, 1, 1, 1], [0], [0]>} : vector<1x16x8xbf16>, vector<1x16x8xbf16>, vector<1x16x16xf32> -> vector<1x16x16xf32>
    "tpu.trace_stop"() : () -> ()
    %cst_25 = arith.constant dense<0xFF800000> : vector<1x16xf32>
    %82 = vector.multi_reduction <maximumf>, %81, %cst_25 [2] : vector<1x16x16xf32> to vector<1x16xf32>
    %83 = vector.shape_cast %82 : vector<1x16xf32> to vector<1x16x1xf32>
    %84 = vector.broadcast %83 : vector<1x16x1xf32> to vector<1x16x16xf32>
    %85 = arith.subf %81, %84 : vector<1x16x16xf32>
    %86 = math.exp %85 : vector<1x16x16xf32>
    %cst_26 = arith.constant dense<0.000000e+00> : vector<1x16xf32>
    %87 = vector.multi_reduction <add>, %86, %cst_26 [2] : vector<1x16x16xf32> to vector<1x16xf32>
    %88 = vector.shape_cast %87 : vector<1x16xf32> to vector<1x16x1xf32>
    %89 = tpu.reciprocal %88 {approx = true} : vector<1x16x1xf32> -> vector<1x16x1xf32>
    %90 = vector.broadcast %89 : vector<1x16x1xf32> to vector<1x16x16xf32>
    %91 = arith.mulf %86, %90 : vector<1x16x16xf32>
    %92 = arith.truncf %91 : vector<1x16x16xf32> to vector<1x16x16xbf16>
    "tpu.trace_start"() <{level = 10 : i32, message = "bqk,bke->bqe"}> : () -> ()
    %cst_27 = arith.constant dense<0.000000e+00> : vector<1x16x8xf32>
    %93 = tpu.matmul %92, %80, %cst_27 {dimension_numbers = #tpu.dot_dimension_numbers<[2], [1], [1], [2], [0, 0, 0, 1, 1, 2], [0], [0]>} : vector<1x16x16xbf16>, vector<1x16x8xbf16>, vector<1x16x8xf32> -> vector<1x16x8xf32>
    "tpu.trace_stop"() : () -> ()
    %94 = vector.shape_cast %93 : vector<1x16x8xf32> to vector<16x8xf32>
    %95 = arith.truncf %94 : vector<16x8xf32> to vector<16x8xbf16>
    %c0_28 = arith.constant 0 : index
    %c16 = arith.constant 16 : index
    %c0_29 = arith.constant 0 : index
    %96 = vector.load %arg5[%c0_28, %c16, %c0_29] : memref<1x32x32xbf16, #tpu.memory_space<vmem>>, vector<1x8x32xbf16>
    %97 = vector.shape_cast %96 : vector<1x8x32xbf16> to vector<8x32xbf16>
    %cst_30 = arith.constant dense<0.000000e+00> : vector<16x32xf32>
    %98 = tpu.matmul %95, %97, %cst_30 {dimension_numbers = #tpu.dot_dimension_numbers<[1], [0], [0], [1], [0, 0, 1, 1], [], []>} : vector<16x8xbf16>, vector<8x32xbf16>, vector<16x32xf32> -> vector<16x32xf32>
    %99 = arith.addf %71, %98 : vector<16x32xf32>
    %100 = vector.extract_strided_slice %12 {offsets = [0, 24], sizes = [16, 8], strides = [1, 1]} : vector<16x32xf32> to vector<16x8xf32>
    %101 = arith.truncf %100 : vector<16x8xf32> to vector<16x8xbf16>
    %102 = vector.shape_cast %101 : vector<16x8xbf16> to vector<1x16x8xbf16>
    %103 = vector.extract_strided_slice %13 {offsets = [0, 24], sizes = [16, 8], strides = [1, 1]} : vector<16x32xf32> to vector<16x8xf32>
    %104 = arith.truncf %103 : vector<16x8xf32> to vector<16x8xbf16>
    %105 = vector.shape_cast %104 : vector<16x8xbf16> to vector<1x16x8xbf16>
    %106 = vector.extract_strided_slice %14 {offsets = [0, 24], sizes = [16, 8], strides = [1, 1]} : vector<16x32xf32> to vector<16x8xf32>
    %107 = arith.truncf %106 : vector<16x8xf32> to vector<16x8xbf16>
    %108 = vector.shape_cast %107 : vector<16x8xbf16> to vector<1x16x8xbf16>
    "tpu.trace_start"() <{level = 10 : i32, message = "bqe,bke->bqk"}> : () -> ()
    %cst_31 = arith.constant dense<0.000000e+00> : vector<1x16x16xf32>
    %109 = tpu.matmul %102, %105, %cst_31 {dimension_numbers = #tpu.dot_dimension_numbers<[2], [2], [1], [1], [0, 0, 0, 1, 1, 1], [0], [0]>} : vector<1x16x8xbf16>, vector<1x16x8xbf16>, vector<1x16x16xf32> -> vector<1x16x16xf32>
    "tpu.trace_stop"() : () -> ()
    %cst_32 = arith.constant dense<0xFF800000> : vector<1x16xf32>
    %110 = vector.multi_reduction <maximumf>, %109, %cst_32 [2] : vector<1x16x16xf32> to vector<1x16xf32>
    %111 = vector.shape_cast %110 : vector<1x16xf32> to vector<1x16x1xf32>
    %112 = vector.broadcast %111 : vector<1x16x1xf32> to vector<1x16x16xf32>
    %113 = arith.subf %109, %112 : vector<1x16x16xf32>
    %114 = math.exp %113 : vector<1x16x16xf32>
    %cst_33 = arith.constant dense<0.000000e+00> : vector<1x16xf32>
    %115 = vector.multi_reduction <add>, %114, %cst_33 [2] : vector<1x16x16xf32> to vector<1x16xf32>
    %116 = vector.shape_cast %115 : vector<1x16xf32> to vector<1x16x1xf32>
    %117 = tpu.reciprocal %116 {approx = true} : vector<1x16x1xf32> -> vector<1x16x1xf32>
    %118 = vector.broadcast %117 : vector<1x16x1xf32> to vector<1x16x16xf32>
    %119 = arith.mulf %114, %118 : vector<1x16x16xf32>
    %120 = arith.truncf %119 : vector<1x16x16xf32> to vector<1x16x16xbf16>
    "tpu.trace_start"() <{level = 10 : i32, message = "bqk,bke->bqe"}> : () -> ()
    %cst_34 = arith.constant dense<0.000000e+00> : vector<1x16x8xf32>
    %121 = tpu.matmul %120, %108, %cst_34 {dimension_numbers = #tpu.dot_dimension_numbers<[2], [1], [1], [2], [0, 0, 0, 1, 1, 2], [0], [0]>} : vector<1x16x16xbf16>, vector<1x16x8xbf16>, vector<1x16x8xf32> -> vector<1x16x8xf32>
    "tpu.trace_stop"() : () -> ()
    %122 = vector.shape_cast %121 : vector<1x16x8xf32> to vector<16x8xf32>
    %123 = arith.truncf %122 : vector<16x8xf32> to vector<16x8xbf16>
    %c0_35 = arith.constant 0 : index
    %c24 = arith.constant 24 : index
    %c0_36 = arith.constant 0 : index
    %124 = vector.load %arg5[%c0_35, %c24, %c0_36] : memref<1x32x32xbf16, #tpu.memory_space<vmem>>, vector<1x8x32xbf16>
    %125 = vector.shape_cast %124 : vector<1x8x32xbf16> to vector<8x32xbf16>
    %cst_37 = arith.constant dense<0.000000e+00> : vector<16x32xf32>
    %126 = tpu.matmul %123, %125, %cst_37 {dimension_numbers = #tpu.dot_dimension_numbers<[1], [0], [0], [1], [0, 0, 1, 1], [], []>} : vector<16x8xbf16>, vector<8x32xbf16>, vector<16x32xf32> -> vector<16x32xf32>
    %127 = arith.addf %99, %126 : vector<16x32xf32>
    %c0_38 = arith.constant 0 : index
    %c0_39 = arith.constant 0 : index
    %c0_40 = arith.constant 0 : index
    %128 = vector.load %arg6[%c0_38, %c0_39, %c0_40] : memref<1x1x32xf32, #tpu.memory_space<vmem>>, vector<1x1x32xf32>
    %129 = vector.shape_cast %128 : vector<1x1x32xf32> to vector<1x32xf32>
    %130 = vector.broadcast %129 : vector<1x32xf32> to vector<16x32xf32>
    %131 = arith.addf %127, %130 : vector<16x32xf32>
    %132 = arith.addf %3, %131 : vector<16x32xf32>
    %c0_41 = arith.constant 0 : index
    %c0_42 = arith.constant 0 : index
    %c0_43 = arith.constant 0 : index
    %133 = vector.load %arg7[%c0_41, %c0_42, %c0_43] : memref<1x1x32xf32, #tpu.memory_space<vmem>>, vector<1x1x32xf32>
    %134 = vector.shape_cast %133 : vector<1x1x32xf32> to vector<1x32xf32>
    %c0_44 = arith.constant 0 : index
    %c0_45 = arith.constant 0 : index
    %c0_46 = arith.constant 0 : index
    %135 = vector.load %arg8[%c0_44, %c0_45, %c0_46] : memref<1x1x32xf32, #tpu.memory_space<vmem>>, vector<1x1x32xf32>
    %136 = vector.shape_cast %135 : vector<1x1x32xf32> to vector<1x32xf32>
    %cst_47 = arith.constant dense<0.000000e+00> : vector<16xf32>
    %137 = vector.multi_reduction <add>, %132, %cst_47 [1] : vector<16x32xf32> to vector<16xf32>
    %138 = vector.shape_cast %137 : vector<16xf32> to vector<16x1xf32>
    %cst_48 = arith.constant 3.200000e+01 : f32
    %139 = vector.broadcast %cst_48 : f32 to vector<16x1xf32>
    %140 = arith.divf %138, %139 : vector<16x1xf32>
    %141 = vector.broadcast %140 : vector<16x1xf32> to vector<16x32xf32>
    %142 = arith.subf %132, %141 : vector<16x32xf32>
    %143 = arith.mulf %142, %142 : vector<16x32xf32>
    %cst_49 = arith.constant dense<0.000000e+00> : vector<16xf32>
    %144 = vector.multi_reduction <add>, %143, %cst_49 [1] : vector<16x32xf32> to vector<16xf32>
    %145 = vector.shape_cast %144 : vector<16xf32> to vector<16x1xf32>
    %cst_50 = arith.constant 3.200000e+01 : f32
    %146 = vector.broadcast %cst_50 : f32 to vector<16x1xf32>
    %147 = arith.divf %145, %146 : vector<16x1xf32>
    %148 = vector.broadcast %140 : vector<16x1xf32> to vector<16x32xf32>
    %149 = arith.subf %132, %148 : vector<16x32xf32>
    %cst_51 = arith.constant 9.99999974E-6 : f32
    %150 = vector.broadcast %cst_51 : f32 to vector<16x1xf32>
    %151 = arith.addf %147, %150 : vector<16x1xf32>
    %152 = math.rsqrt %151 : vector<16x1xf32>
    %153 = vector.broadcast %152 : vector<16x1xf32> to vector<16x32xf32>
    %154 = arith.mulf %149, %153 : vector<16x32xf32>
    %155 = vector.broadcast %134 : vector<1x32xf32> to vector<16x32xf32>
    %156 = arith.mulf %154, %155 : vector<16x32xf32>
    %157 = vector.broadcast %136 : vector<1x32xf32> to vector<16x32xf32>
    %158 = arith.addf %156, %157 : vector<16x32xf32>
    %159 = arith.truncf %158 : vector<16x32xf32> to vector<16x32xbf16>
    %c0_52 = arith.constant 0 : index
    %c0_53 = arith.constant 0 : index
    %c0_54 = arith.constant 0 : index
    %160 = vector.load %arg9[%c0_52, %c0_53, %c0_54] : memref<1x32x64xbf16, #tpu.memory_space<vmem>>, vector<1x32x64xbf16>
    %161 = vector.shape_cast %160 : vector<1x32x64xbf16> to vector<32x64xbf16>
    %cst_55 = arith.constant dense<0.000000e+00> : vector<16x64xf32>
    %162 = tpu.matmul %159, %161, %cst_55 {dimension_numbers = #tpu.dot_dimension_numbers<[1], [0], [0], [1], [0, 0, 1, 1], [], []>} : vector<16x32xbf16>, vector<32x64xbf16>, vector<16x64xf32> -> vector<16x64xf32>
    %c0_56 = arith.constant 0 : index
    %c0_57 = arith.constant 0 : index
    %c0_58 = arith.constant 0 : index
    %163 = vector.load %arg10[%c0_56, %c0_57, %c0_58] : memref<1x1x64xf32, #tpu.memory_space<vmem>>, vector<1x1x64xf32>
    %164 = vector.shape_cast %163 : vector<1x1x64xf32> to vector<1x64xf32>
    %165 = vector.broadcast %164 : vector<1x64xf32> to vector<16x64xf32>
    %166 = arith.addf %162, %165 : vector<16x64xf32>
    %cst_59 = arith.constant 0.000000e+00 : f32
    %167 = vector.broadcast %cst_59 : f32 to vector<16x64xf32>
    %168 = arith.maximumf %166, %167 : vector<16x64xf32>
    %169 = arith.truncf %168 : vector<16x64xf32> to vector<16x64xbf16>
    %c0_60 = arith.constant 0 : index
    %c0_61 = arith.constant 0 : index
    %c0_62 = arith.constant 0 : index
    %170 = vector.load %arg11[%c0_60, %c0_61, %c0_62] : memref<1x64x32xbf16, #tpu.memory_space<vmem>>, vector<1x64x32xbf16>
    %171 = vector.shape_cast %170 : vector<1x64x32xbf16> to vector<64x32xbf16>
    %cst_63 = arith.constant dense<0.000000e+00> : vector<16x32xf32>
    %172 = tpu.matmul %169, %171, %cst_63 {dimension_numbers = #tpu.dot_dimension_numbers<[1], [0], [0], [1], [0, 0, 1, 1], [], []>} : vector<16x64xbf16>, vector<64x32xbf16>, vector<16x32xf32> -> vector<16x32xf32>
    %c0_64 = arith.constant 0 : index
    %c0_65 = arith.constant 0 : index
    %c0_66 = arith.constant 0 : index
    %173 = vector.load %arg12[%c0_64, %c0_65, %c0_66] : memref<1x1x32xf32, #tpu.memory_space<vmem>>, vector<1x1x32xf32>
    %174 = vector.shape_cast %173 : vector<1x1x32xf32> to vector<1x32xf32>
    %175 = vector.broadcast %174 : vector<1x32xf32> to vector<16x32xf32>
    %176 = arith.addf %172, %175 : vector<16x32xf32>
    %177 = arith.addf %158, %176 : vector<16x32xf32>
    %c0_67 = arith.constant 0 : index
    %c0_68 = arith.constant 0 : index
    %c0_69 = arith.constant 0 : index
    %178 = vector.load %arg13[%c0_67, %c0_68, %c0_69] : memref<1x1x32xf32, #tpu.memory_space<vmem>>, vector<1x1x32xf32>
    %179 = vector.shape_cast %178 : vector<1x1x32xf32> to vector<1x32xf32>
    %c0_70 = arith.constant 0 : index
    %c0_71 = arith.constant 0 : index
    %c0_72 = arith.constant 0 : index
    %180 = vector.load %arg14[%c0_70, %c0_71, %c0_72] : memref<1x1x32xf32, #tpu.memory_space<vmem>>, vector<1x1x32xf32>
    %181 = vector.shape_cast %180 : vector<1x1x32xf32> to vector<1x32xf32>
    %cst_73 = arith.constant dense<0.000000e+00> : vector<16xf32>
    %182 = vector.multi_reduction <add>, %177, %cst_73 [1] : vector<16x32xf32> to vector<16xf32>
    %183 = vector.shape_cast %182 : vector<16xf32> to vector<16x1xf32>
    %cst_74 = arith.constant 3.200000e+01 : f32
    %184 = vector.broadcast %cst_74 : f32 to vector<16x1xf32>
    %185 = arith.divf %183, %184 : vector<16x1xf32>
    %186 = vector.broadcast %185 : vector<16x1xf32> to vector<16x32xf32>
    %187 = arith.subf %177, %186 : vector<16x32xf32>
    %188 = arith.mulf %187, %187 : vector<16x32xf32>
    %cst_75 = arith.constant dense<0.000000e+00> : vector<16xf32>
    %189 = vector.multi_reduction <add>, %188, %cst_75 [1] : vector<16x32xf32> to vector<16xf32>
    %190 = vector.shape_cast %189 : vector<16xf32> to vector<16x1xf32>
    %cst_76 = arith.constant 3.200000e+01 : f32
    %191 = vector.broadcast %cst_76 : f32 to vector<16x1xf32>
    %192 = arith.divf %190, %191 : vector<16x1xf32>
    %193 = vector.broadcast %185 : vector<16x1xf32> to vector<16x32xf32>
    %194 = arith.subf %177, %193 : vector<16x32xf32>
    %cst_77 = arith.constant 9.99999974E-6 : f32
    %195 = vector.broadcast %cst_77 : f32 to vector<16x1xf32>
    %196 = arith.addf %192, %195 : vector<16x1xf32>
    %197 = math.rsqrt %196 : vector<16x1xf32>
    %198 = vector.broadcast %197 : vector<16x1xf32> to vector<16x32xf32>
    %199 = arith.mulf %194, %198 : vector<16x32xf32>
    %200 = vector.broadcast %179 : vector<1x32xf32> to vector<16x32xf32>
    %201 = arith.mulf %199, %200 : vector<16x32xf32>
    %202 = vector.broadcast %181 : vector<1x32xf32> to vector<16x32xf32>
    %203 = arith.addf %201, %202 : vector<16x32xf32>
    %c0_78 = arith.constant 0 : index
    %c0_79 = arith.constant 0 : index
    %204 = vector.load %arg16[%c0_78, %c0_79] : memref<16x32xf32, #tpu.memory_space<vmem>>, vector<16x32xf32>
    tpu.vector_store %arg16[%c0_78, %c0_79], %203 {strides = array<i32>} : memref<16x32xf32, #tpu.memory_space<vmem>>, vector<16x32xf32>,
    %c1_i32 = arith.constant 1 : i32
    %205 = arith.cmpi eq, %arg1, %c1_i32 : i32
    %206 = arith.extui %205 : i1 to i32
    %c0_i32_80 = arith.constant 0 : i32
    %207 = arith.cmpi ne, %206, %c0_i32_80 : i32
    scf.if %207 {
      %208 = vector.shape_cast %203 : vector<16x32xf32> to vector<1x16x32xf32>
      %c0_81 = arith.constant 0 : index
      %c0_82 = arith.constant 0 : index
      %c0_83 = arith.constant 0 : index
      %209 = vector.load %arg15[%c0_81, %c0_82, %c0_83] : memref<1x16x32xf32, #tpu.memory_space<vmem>>, vector<1x16x32xf32>
      tpu.vector_store %arg15[%c0_81, %c0_82, %c0_83], %208 {strides = array<i32>} : memref<1x16x32xf32, #tpu.memory_space<vmem>>, vector<1x16x32xf32>,
    } else {
    }
    return
  }
  func.func @transform_0(%arg0: i32, %arg1: i32) -> (i32, i32, i32) {
    %c0_i32 = arith.constant 0 : i32
    %c0_i32_0 = arith.constant 0 : i32
    %c0_i32_1 = arith.constant 0 : i32
    return %arg0, %c0_i32, %c0_i32_0 : i32, i32, i32
  }
  func.func @transform_1(%arg0: i32, %arg1: i32) -> (i32, i32, i32) {
    %c0_i32 = arith.constant 0 : i32
    %c0_i32_0 = arith.constant 0 : i32
    %c0_i32_1 = arith.constant 0 : i32
    return %arg1, %c0_i32, %c0_i32_0 : i32, i32, i32
  }
  func.func @transform_2(%arg0: i32, %arg1: i32) -> (i32, i32, i32) {
    %c0_i32 = arith.constant 0 : i32
    %c0_i32_0 = arith.constant 0 : i32
    %c0_i32_1 = arith.constant 0 : i32
    return %arg1, %c0_i32, %c0_i32_0 : i32, i32, i32
  }
  func.func @transform_3(%arg0: i32, %arg1: i32) -> (i32, i32, i32) {
    %c0_i32 = arith.constant 0 : i32
    %c0_i32_0 = arith.constant 0 : i32
    %c0_i32_1 = arith.constant 0 : i32
    return %arg1, %c0_i32, %c0_i32_0 : i32, i32, i32
  }
  func.func @transform_4(%arg0: i32, %arg1: i32) -> (i32, i32, i32) {
    %c0_i32 = arith.constant 0 : i32
    %c0_i32_0 = arith.constant 0 : i32
    %c0_i32_1 = arith.constant 0 : i32
    return %arg1, %c0_i32, %c0_i32_0 : i32, i32, i32
  }
  func.func @transform_5(%arg0: i32, %arg1: i32) -> (i32, i32, i32) {
    %c0_i32 = arith.constant 0 : i32
    %c0_i32_0 = arith.constant 0 : i32
    %c0_i32_1 = arith.constant 0 : i32
    return %arg1, %c0_i32, %c0_i32_0 : i32, i32, i32
  }
  func.func @transform_6(%arg0: i32, %arg1: i32) -> (i32, i32, i32) {
    %c0_i32 = arith.constant 0 : i32
    %c0_i32_0 = arith.constant 0 : i32
    %c0_i32_1 = arith.constant 0 : i32
    return %arg1, %c0_i32, %c0_i32_0 : i32, i32, i32
  }
  func.func @transform_7(%arg0: i32, %arg1: i32) -> (i32, i32, i32) {
    %c0_i32 = arith.constant 0 : i32
    %c0_i32_0 = arith.constant 0 : i32
    %c0_i32_1 = arith.constant 0 : i32
    return %arg1, %c0_i32, %c0_i32_0 : i32, i32, i32
  }
  func.func @transform_8(%arg0: i32, %arg1: i32) -> (i32, i32, i32) {
    %c0_i32 = arith.constant 0 : i32
    %c0_i32_0 = arith.constant 0 : i32
    %c0_i32_1 = arith.constant 0 : i32
    return %arg1, %c0_i32, %c0_i32_0 : i32, i32, i32
  }
  func.func @transform_9(%arg0: i32, %arg1: i32) -> (i32, i32, i32) {
    %c0_i32 = arith.constant 0 : i32
    %c0_i32_0 = arith.constant 0 : i32
    %c0_i32_1 = arith.constant 0 : i32
    return %arg1, %c0_i32, %c0_i32_0 : i32, i32, i32
  }
  func.func @transform_10(%arg0: i32, %arg1: i32) -> (i32, i32, i32) {
    %c0_i32 = arith.constant 0 : i32
    %c0_i32_0 = arith.constant 0 : i32
    %c0_i32_1 = arith.constant 0 : i32
    return %arg1, %c0_i32, %c0_i32_0 : i32, i32, i32
  }
  func.func @transform_11(%arg0: i32, %arg1: i32) -> (i32, i32, i32) {
    %c0_i32 = arith.constant 0 : i32
    %c0_i32_0 = arith.constant 0 : i32
    %c0_i32_1 = arith.constant 0 : i32
    return %arg1, %c0_i32, %c0_i32_0 : i32, i32, i32
  }
  func.func @transform_12(%arg0: i32, %arg1: i32) -> (i32, i32, i32) {
    %c0_i32 = arith.constant 0 : i32
    %c0_i32_0 = arith.constant 0 : i32
    %c0_i32_1 = arith.constant 0 : i32
    return %arg1, %c0_i32, %c0_i32_0 : i32, i32, i32
  }
  func.func @transform_13(%arg0: i32, %arg1: i32) -> (i32, i32, i32) {
    %c0_i32 = arith.constant 0 : i32
    %c0_i32_0 = arith.constant 0 : i32
    %c0_i32_1 = arith.constant 0 : i32
    return %arg0, %c0_i32, %c0_i32_0 : i32, i32, i32
  }
}

</mosaic_0001>

<bundles_post_ra>
// kernel: tpu_custom_call.1
= control target key start
LH: loop header
LB: loop body
LE: loop exit
PB: predicated region body
PF: predicated region fallthrough
CT: control target
= control target key end

     0   :  { %s3377_s0 = inlined_call_operand.vmem [shape: f32[2,16,32], index: 0, kind: input, shape index: {}]   ;;  %s3378_s1 = inlined_call_operand.vmem [shape: bf16[2,32,96], index: 1, kind: input, shape index: {}]   ;;  %s3379_s2 = inlined_call_operand.vmem [shape: f32[2,1,96], index: 2, kind: input, shape index: {}]   ;;  %s3380_s3 = inlined_call_operand.vmem [shape: bf16[2,32,32], index: 3, kind: input, shape index: {}]   ;;  %s3381_s4 = inlined_call_operand.hbm [shape: f32[2,1,32], index: 4, kind: input, shape index: {}]   ;;  %s3382_s5 = inlined_call_operand.hbm [shape: f32[2,1,32], index: 5, kind: input, shape index: {}]   ;;  %s3383_s6 = inlined_call_operand.hbm [shape: f32[2,1,32], index: 6, kind: input, shape index: {}]   ;;  %s3384_s7 = inlined_call_operand.hbm [shape: bf16[2,32,64], index: 7, kind: input, shape index: {}]   ;;  %s3385_s8 = inlined_call_operand.hbm [shape: f32[2,1,64], index: 8, kind: input, shape index: {}]   ;;  %s3386_s9 = inlined_call_operand.vmem [shape: bf16[2,64,32], index: 9, kind: input, shape index: {}]   ;;  %s3387_s10 = inlined_call_operand.vmem [shape: f32[2,1,32], index: 10, kind: input, shape index: {}]   ;;  %s3388_s11 = inlined_call_operand.vmem [shape: f32[2,1,32], index: 11, kind: input, shape index: {}]   ;;  %s3389_s12 = inlined_call_operand.vmem [shape: f32[2,1,32], index: 12, kind: input, shape index: {}]   ;;  %s3390_s13 = inlined_call_operand.hbm [shape: f32[2,16,32], index: 13, kind: output, shape index: {}]  }
   0x1   :  { %3409 = sst [smem:[#allocation29_spill]] %s3377_s0 }
   0x2   :  { %3410 = sst [smem:[#allocation30_spill]] %s3378_s1 }
   0x3   :  { %3411 = sst [smem:[#allocation31_spill]] %s3379_s2 }
   0x4   :  { %3412 = sst [smem:[#allocation32_spill]] %s3380_s3 }
   0x5   :  { %3413 = sst [smem:[#allocation33_spill]] %s3381_s4 }
   0x6   :  { %3414 = sst [smem:[#allocation34_spill]] %s3382_s5 }
   0x7   :  { %3415 = sst [smem:[#allocation35_spill]] %s3383_s6 }
   0x8   :  { %3416 = sst [smem:[#allocation36_spill]] %s3384_s7 }
   0x9   :  { %3417 = sst [smem:[#allocation37_spill]] %s3385_s8 }
   0xa   :  { %3418 = sst [smem:[#allocation38_spill]] %s3386_s9 }
   0xb   :  { %3419 = sst [smem:[#allocation39_spill]] %s3387_s10 }
   0xc   :  { %3420 = sst [smem:[#allocation40_spill]] %s3388_s11 }
   0xd   :  { %3421 = sst [smem:[#allocation41_spill]] %s3389_s12 }
   0xe   :  { %3422 = sst [smem:[#allocation42_spill]] %s3390_s13 }
   0xf   :  { %18 = vsyncpa [#allocation4], 0 }
  0x10   :  { %20 = vsyncpa [#allocation4 + $0x1], 0 }
  0x11   :  { %21 = vsyncpa [#allocation7], 0 }
  0x12   :  { %23 = vsyncpa [#allocation7 + $0x1], 0 }
  0x13   :  { %24 = vsyncpa [#allocation10], 0 }
  0x14   :  { %26 = vsyncpa [#allocation10 + $0x1], 0 }
  0x15   :  { %27 = vsyncpa [#allocation5], 0 }
  0x16   :  { %29 = vsyncpa [#allocation5 + $0x1], 0  ;;  %s2789_s25 = smov 0   ;;  %s2791_s26 = smov 0  }
  0x17   :  { %s2793_s27 = smov 0   ;;  %s2795_s28 = smov 0  }
  0x18   :  { %s2797_s29 = smov 0   ;;  %s2799_s30 = smov 0  }
  0x19   :  { %s2801_s14 = smov 0   ;;  %s2803_s15 = smov 0  }
  0x1a   :  { %s2805_s16 = smov 0   ;;  %s2807_s17 = smov 0  }
  0x1b   :  { %s2809_s18 = smov 0  }
  0x1c LB: > { %3423 = sst [smem:[#allocation17_spill]] %s2654_s25  ;;  %s2843_s19 = sadd.s32 4294967295, %s2694_s18   ;;  %s2694_s18 = sphi %s2809_s18, %s35_s18   ;;  %s2690_s17 = sphi %s2807_s17, %s3489_s17   ;;  %s2686_s16 = sphi %s2805_s16, %s3485_s16   ;;  %s2682_s15 = sphi %s2803_s15, %s3484_s15   ;;  %s2678_s14 = sphi %s2801_s14, %s3483_s14   ;;  %s2674_s30 = sphi %s2799_s30, %s3482_s30   ;;  %s2670_s29 = sphi %s2797_s29, %s3481_s29   ;;  %s2666_s28 = sphi %s2795_s28, %s3480_s28   ;;  %s2662_s27 = sphi %s2793_s27, %s3479_s27   ;;  %s2658_s26 = sphi %s2791_s26, %s3488_s26   ;;  %s2654_s25 = sphi %s2789_s25, %s3487_s25  }
  0x1d   : > { %3424 = sst [smem:[#allocation18_spill]] %s2662_s27  ;;  %s2027_s20 = sadd.s32 4294967294, %s2694_s18  }
  0x1e   : > { %3425 = sst [smem:[#allocation19_spill]] %s2670_s29  ;;  %s44_s21 = sadd.s32 1, %s2686_s16 }
  0x1f   : > { %3426 = sst [smem:[#allocation20_spill]] %s2674_s30  ;;  %s47_s22 = sadd.s32 1, %s2690_s17 }
  0x20   : > { %3427 = sst [smem:[#allocation21_spill]] %s2686_s16  ;;  %p45_p0 = scmp.ge.s32.totalorder %s44_s21, 2 }
  0x21   : > { %3428 = sst [smem:[#allocation22_spill]] %s2690_s17  ;;  %s158_s23 = sadd.s32 1, %s2674_s30 }
  0x22   : > { %p165_p1 = scmp.ne.s32.totalorder %s2674_s30, %s2670_s29  ;;  %p166_p2 = scmp.eq.s32.totalorder %s2694_s18, 0 }
  0x23   : > { %s3491_s21 = smov (%p45_p0, %s44_s21), 0  ;;  %s3493_s22 = smov (!%p45_p0, %s47_s22), %s2690_s17 }
  0x24   : > { %3429 = sst [smem:[#allocation23_spill]] %s3491_s21  ;;  %s155_s24 = ssub.s32 %s2686_s16, %s3491_s21 }
  0x25   : > { %p2857_p3 = por %p166_p2, %p165_p1  ;;  %p49_p4 = scmp.ge.s32.totalorder %s3493_s22, 2 }
  0x26   : > { %p156_p5 = scmp.eq.s32.totalorder %s155_s24, 0  ;;  %p171_p6 = scmp.ne.s32.totalorder %s2670_s29, %s2666_s28 }
  0x27   : > { %p172_p7 = scmp.eq.s32.totalorder %s2843_s19, 0  ;;  %s3495_s22 = smov (%p49_p4, %s3493_s22), 0 }
  0x28   : > { %3431 = sst [smem:[#allocation24_spill]] %s3495_s22  ;;  %s389_s11 = ssub.s32 %s2690_s17, %s3495_s22 }
  0x29   : > { %s2866_s12 = scalar_select %p156_p5, %s2674_s30, %s158_s23  }
  0x2a   : > { %p2868_p8 = por %p172_p7, %p171_p6  ;;  %p390_p9 = scmp.eq.s32.totalorder %s389_s11, 0 }
  0x2b   : > { %3432 = sst [smem:[#allocation25_spill]] %s2866_s12  ;;  %s392_s10 = sadd.s32 1, %s2662_s27 }
  0x2c   : > { %s3433_s21 = scalar_select %p2868_p8, 1, 0 }
  0x2d   : > { %p402_p10 = scmp.ne.s32.totalorder %s2662_s27, %s2658_s26  ;;  %p403_p11 = scmp.eq.s32.totalorder %s2843_s19, 3 }
  0x2e   : > { %s2879_s28 = scalar_select %p390_p9, %s2662_s27, %s392_s10  }
  0x2f   : > { %p2881_p12 = por %p403_p11, %p402_p10  ;;  %p408_p13 = scmp.ne.s32.totalorder %s2658_s26, %s2654_s25 }
  0x30   : > { %3434 = sst [smem:[#allocation26_spill]] %s2879_s28  ;;  %p409_p0 = scmp.eq.s32.totalorder %s2027_s20, 3 }
  0x31   : > { %s3435_s24 = scalar_select %p2881_p12, 1, 0 }
  0x32   : > { %p2259_p1 = scmp.lt.s32.totalorder %s2694_s18, 4  ;;  %s2889_s23 = sand.u32 1, %s2674_s30  }
  0x33   : > { %3436 = sst [smem:[#allocation27_spill]] %s3435_s24  ;;  %p2891_p2 = por %p409_p0, %p408_p13 }
  0x34   : > { %s2896_s11 = sshll.u32 %s2686_s16, 4  ;;  %p2900_p4 = pnand %p2259_p1, %p2857_p3 }
  0x35   : > { %s3437_s22 = scalar_select %p2891_p2, 1, 0 }
  0x36   : > { %s3439_s10 = scalar_select %p2900_p4, 1, 0 }
  0x37   : > { %3438 = sst [smem:[#allocation28_spill]] %s3437_s22  ;;  %s3401_s17 = sand.u32 1, %s2694_s18  }
  0x38   : > { %s3440_s5 = sld [smem:[#allocation34_spill]]  ;;  %s479_s28 = scalar_lea.vmem [#allocation6], %s2889_s23 }
  0x39   : > { %s486_s27 = sshll.u32 %s479_s28, 4  ;;  %s2917_s13 = scalar_lea.sflag [#allocation7], %s3401_s17  ;;  %s2912_s27 = int_to_ptr.vmem [resolvable:$true] %s486_s27 }
  0x3a   : > { %p2923_p6 = pneg %p2900_p4 }
  0x3e   : > { %s2909_s30 = scalar_lea.hbm %s3440_s5, %s2896_s11  ;;  %s2419_s28 = scalar_lea.hbm %s3440_s5, 32 }
  0x3f   : > { %s2414_s22 = scalar_lea.hbm %s2909_s30, 16  ;;  %p2420_p10 = scmp.lt.u32.totalorder %s2909_s30, %s3440_s5 }
  0x40   : > { %p2415_p3 = scmp.ne.s32.totalorder %s2909_s30, %s2414_s22  ;;  %p2421_p11 = scmp.lt.u32.totalorder %s2419_s28, %s2414_s22 }
  0x41   : > { %p2423_p0 = scmp.lt.u32.totalorder %s2414_s22, %s2909_s30 }
  0x42   : > { %p2417_p7 = pnand %p2923_p6, %p2415_p3  ;;  %p2422_p13 = por %p2421_p11, %p2420_p10 }
  0x44   : > { %p2418_p9 = pneg %p2417_p7  ;;  %p2424_p1 = por %p2423_p0, %p2422_p13 }
  0x46   : > { %p2425_p5 = pnand %p2424_p1, %p2418_p9 }
  0x48   : > { %2428 = shalt.err (!%p2425_p5)
}
  0x49   : > { %s2429_s17 = scalar_lea.vmem %s2912_s27, 16  ;;  %s2696_s12 = smov [#allocation6]  }
  0x4a   : > { %p2430_p3 = scmp.ne.s32.totalorder %s2912_s27, %s2429_s17  ;;  %s2434_s20 = sshll.u32 %s2696_s12, 4  ;;  %s2435_s20 = int_to_ptr.vmem [resolvable:$false] %s2434_s20 }
  0x4b   : > { %s2436_s9 = scalar_lea.vmem %s2435_s20, 32  ;;  %p2437_p12 = scmp.lt.s32.totalorder %s2912_s27, %s2435_s20 }
  0x4c   : > { %p2432_p7 = pnand %p2430_p3, %p2923_p6  ;;  %p2438_p8 = scmp.lt.s32.totalorder %s2436_s9, %s2429_s17 }
  0x4e   : > { %p2433_p2 = pneg %p2432_p7  ;;  %p2439_p10 = por %p2438_p8, %p2437_p12 }
  0x50   : > { %p2440_p11 = pnand %p2439_p10, %p2433_p2 }
  0x52   : > { %2443 = shalt.err (!%p2440_p11)
}
  0x53   : > { %2245 = dma.hbm_to_vmem [thread:$0]  (!%p2900_p4), %s2909_s30, 16, %s2912_s27, %s2917_s13  }
  0x54   : > { %p572_p5 = scmp.lt.s32.totalorder %s2694_s18, 5  ;;  %s2033_s22 = sshll.u32 %s2889_s23, 4 }
  0x55   : > { %s2086_s24 = sshll.u32 %s2686_s16, 8  ;;  %p3442_p9 = scmp.ge.s32.totalorder %s2694_s18, 1 }
  0x56   : > { %s3444_s7 = sld [smem:[#allocation36_spill]]  ;;  %s514_s9 = scalar_lea.vmem [#allocation9], %s2033_s22 }
  0x57   : > { %p2952_p13 = pnand %p3442_p9, %p572_p5  ;;  %s521_s5 = sshll.u32 %s514_s9, 4  ;;  %s2961_s5 = int_to_ptr.vmem [resolvable:$true] %s521_s5 }
  0x58   : > { %s3445_s27 = sand.u32 1, %s2694_s18  }
  0x59   : > { %s3443_s17 = scalar_select %p2952_p13, 1, 0 }
  0x5a   : > { %s2965_s30 = scalar_lea.sflag [#allocation10], %s3445_s27 }
  0x5c   : > { %s2959_s20 = scalar_lea.hbm %s3444_s7, %s2086_s24  ;;  %s2449_s24 = scalar_lea.hbm %s3444_s7, 512 }
  0x5d   : > { %s2444_s16 = scalar_lea.hbm %s2959_s20, 256  ;;  %p2450_p0 = scmp.lt.u32.totalorder %s2959_s20, %s3444_s7 }
  0x5e   : > { %p2445_p8 = scmp.ne.s32.totalorder %s2959_s20, %s2444_s16  ;;  %p2451_p1 = scmp.lt.u32.totalorder %s2449_s24, %s2444_s16 }
  0x5f   : > { %p2453_p7 = scmp.lt.u32.totalorder %s2444_s16, %s2959_s20 }
  0x60   : > { %p2447_p12 = pnand %p2445_p8, %p2923_p6  ;;  %p2452_p3 = por %p2451_p1, %p2450_p0 }
  0x62   : > { %p2448_p2 = pneg %p2447_p12  ;;  %p2454_p10 = por %p2453_p7, %p2452_p3 }
  0x64   : > { %p2455_p11 = pnand %p2454_p10, %p2448_p2 }
  0x66   : > { %2458 = shalt.err (!%p2455_p11)
}
  0x67   : > { %s2459_s22 = scalar_lea.vmem %s2961_s5, 256  ;;  %s2697_s3 = smov [#allocation9]  }
  0x68   : > { %p2460_p5 = scmp.ne.s32.totalorder %s2961_s5, %s2459_s22  ;;  %s2464_s9 = sshll.u32 %s2697_s3, 4  ;;  %s2465_s9 = int_to_ptr.vmem [resolvable:$false] %s2464_s9 }
  0x69   : > { %s2466_s2 = scalar_lea.vmem %s2465_s9, 512  ;;  %p2467_p12 = scmp.lt.s32.totalorder %s2961_s5, %s2465_s9 }
  0x6a   : > { %p2462_p9 = pnand %p2460_p5, %p2923_p6  ;;  %p2468_p13 = scmp.lt.s32.totalorder %s2466_s2, %s2459_s22 }
  0x6c   : > { %p2463_p8 = pneg %p2462_p9  ;;  %p2469_p0 = por %p2468_p13, %p2467_p12 }
  0x6e   : > { %p2470_p1 = pnand %p2469_p0, %p2463_p8 }
  0x70   : > { %2473 = shalt.err (!%p2470_p1)
}
  0x71   : > { %s2698_s16 = smov 64   ;;  %s2699_s27 = smov 4  }
  0x72   : > { %2251 = dma.hbm_to_vmem [thread:$0]  (!%p2900_p4), %s2959_s20, 256, %s2961_s5, %s2965_s30, %s2698_s16, %s2698_s16, %s2699_s27  }
  0x73   : > { %s3446_s4 = sld [smem:[#allocation33_spill]]  ;;  %s462_s22 = scalar_lea.vmem [#allocation3], %s2889_s23 }
  0x74   : > { %s469_s3 = sshll.u32 %s462_s22, 4  ;;  %s460_s9 = scalar_lea.sflag [#allocation4], %s2889_s23  ;;  %s470_s3 = int_to_ptr.vmem [resolvable:$true] %s469_s3 }
  0x79   : > { %s2993_s12 = scalar_lea.hbm %s3446_s4, %s2896_s11  ;;  %s2479_s20 = scalar_lea.hbm %s3446_s4, 32 }
  0x7a   : > { %s2474_s2 = scalar_lea.hbm %s2993_s12, 16  ;;  %p2480_p7 = scmp.lt.u32.totalorder %s2993_s12, %s3446_s4 }
  0x7b   : > { %p2475_p13 = scmp.ne.s32.totalorder %s2993_s12, %s2474_s2  ;;  %p2481_p10 = scmp.lt.u32.totalorder %s2479_s20, %s2474_s2 }
  0x7c   : > { %p2483_p5 = scmp.lt.u32.totalorder %s2474_s2, %s2993_s12 }
  0x7d   : > { %p2477_p2 = pnand %p2475_p13, %p2923_p6  ;;  %p2482_p11 = por %p2481_p10, %p2480_p7 }
  0x7f   : > { %p2478_p3 = pneg %p2477_p2  ;;  %p2484_p9 = por %p2483_p5, %p2482_p11 }
  0x81   : > { %p2485_p8 = pnand %p2484_p9, %p2478_p3 }
  0x83   : > { %2488 = shalt.err (!%p2485_p8)
}
  0x84   : > { %s2489_s28 = scalar_lea.vmem %s470_s3, 16  ;;  %s2700_s24 = smov [#allocation3]  }
  0x85   : > { %p2490_p12 = scmp.ne.s32.totalorder %s470_s3, %s2489_s28  ;;  %s2494_s22 = sshll.u32 %s2700_s24, 4  ;;  %s2495_s22 = int_to_ptr.vmem [resolvable:$false] %s2494_s22 }
  0x86   : > { %s2496_s7 = scalar_lea.vmem %s2495_s22, 32  ;;  %p2497_p13 = scmp.lt.s32.totalorder %s470_s3, %s2495_s22 }
  0x87   : > { %p2492_p0 = pnand %p2490_p12, %p2923_p6  ;;  %p2498_p2 = scmp.lt.s32.totalorder %s2496_s7, %s2489_s28 }
  0x89   : > { %p2493_p1 = pneg %p2492_p0  ;;  %p2499_p4 = por %p2498_p2, %p2497_p13 }
  0x8b   : > { %p2500_p7 = pnand %p2499_p4, %p2493_p1 }
  0x8d   : > { %2503 = shalt.err (!%p2500_p7)
}
  0x8e   : > { %p3447_p10 = scmp.ne.s32.totalorder %s3439_s10, 0  ;;  %s3448_s6 = sld [smem:[#allocation35_spill]] }
  0x8f   : > { %s496_s16 = scalar_lea.vmem [#allocation8], %s2889_s23 }
  0x90   : > { %2242 = dma.hbm_to_vmem [thread:$0]  (!%p3447_p10), %s2993_s12, 16, %s470_s3, %s460_s9  }
  0x91   : > { %s503_s27 = sshll.u32 %s496_s16, 4  ;;  %s504_s27 = int_to_ptr.vmem [resolvable:$true] %s503_s27 }
  0x94   : > { %s3018_s20 = scalar_lea.hbm %s3448_s6, %s2896_s11  ;;  %s2509_s12 = scalar_lea.hbm %s3448_s6, 32 }
  0x95   : > { %s2504_s28 = scalar_lea.hbm %s3018_s20, 16  ;;  %p2510_p5 = scmp.lt.u32.totalorder %s3018_s20, %s3448_s6 }
  0x96   : > { %p2505_p4 = scmp.ne.s32.totalorder %s3018_s20, %s2504_s28  ;;  %p2511_p9 = scmp.lt.u32.totalorder %s2509_s12, %s2504_s28 }
  0x97   : > { %p2513_p12 = scmp.lt.u32.totalorder %s2504_s28, %s3018_s20 }
  0x98   : > { %p2507_p3 = pnand %p2505_p4, %p2923_p6  ;;  %p2512_p8 = por %p2511_p9, %p2510_p5 }
  0x9a   : > { %p2508_p11 = pneg %p2507_p3  ;;  %p2514_p0 = por %p2513_p12, %p2512_p8 }
  0x9c   : > { %p2515_p1 = pnand %p2514_p0, %p2508_p11 }
  0x9e   : > { %2518 = shalt.err (!%p2515_p1)
}
  0x9f   : > { %s2519_s7 = scalar_lea.vmem %s504_s27, 16  ;;  %s2701_s2 = smov [#allocation8]  }
  0xa0   : > { %p2520_p13 = scmp.ne.s32.totalorder %s504_s27, %s2519_s7  ;;  %s2524_s5 = sshll.u32 %s2701_s2, 4  ;;  %s2525_s5 = int_to_ptr.vmem [resolvable:$false] %s2524_s5 }
  0xa1   : > { %s2526_s16 = scalar_lea.vmem %s2525_s5, 32  ;;  %p2527_p4 = scmp.lt.s32.totalorder %s504_s27, %s2525_s5 }
  0xa2   : > { %p2522_p2 = pnand %p2520_p13, %p2923_p6  ;;  %p2528_p3 = scmp.lt.s32.totalorder %s2526_s16, %s2519_s7 }
  0xa4   : > { %p2523_p7 = pneg %p2522_p2  ;;  %p2529_p10 = por %p2528_p3, %p2527_p4 }
  0xa6   : > { %p2530_p5 = pnand %p2529_p10, %p2523_p7 }
  0xa8   : > { %2533 = shalt.err (!%p2530_p5)
}
  0xa9   : > { %p3449_p9 = scmp.ne.s32.totalorder %s3439_s10, 0  ;;  %s3450_s8 = sld [smem:[#allocation37_spill]] }
  0xaa   : > { %s534_s12 = scalar_lea.vmem [#allocation11], %s2889_s23 }
  0xab   : > { %2248 = dma.hbm_to_vmem [thread:$0]  (!%p3449_p9), %s3018_s20, 16, %s504_s27, %s2917_s13  }
  0xac   : > { %s541_s3 = sshll.u32 %s534_s12, 4  ;;  %s542_s3 = int_to_ptr.vmem [resolvable:$true] %s541_s3 }
  0xaf   : > { %s3043_s22 = scalar_lea.hbm %s3450_s8, %s2896_s11  ;;  %s2539_s13 = scalar_lea.hbm %s3450_s8, 32 }
  0xb0   : > { %s2534_s9 = scalar_lea.hbm %s3043_s22, 16  ;;  %p2540_p12 = scmp.lt.u32.totalorder %s3043_s22, %s3450_s8 }
  0xb1   : > { %p2535_p10 = scmp.ne.s32.totalorder %s3043_s22, %s2534_s9  ;;  %p2541_p0 = scmp.lt.u32.totalorder %s2539_s13, %s2534_s9 }
  0xb2   : > { %p2543_p13 = scmp.lt.u32.totalorder %s2534_s9, %s3043_s22 }
  0xb3   : > { %p2537_p11 = pnand %p2535_p10, %p2923_p6  ;;  %p2542_p1 = por %p2541_p0, %p2540_p12 }
  0xb5   : > { %p2538_p8 = pneg %p2537_p11  ;;  %p2544_p2 = por %p2543_p13, %p2542_p1 }
  0xb7   : > { %p2545_p7 = pnand %p2544_p2, %p2538_p8 }
  0xb9   : > { %2548 = shalt.err (!%p2545_p7)
}
  0xba   : > { %s2549_s23 = scalar_lea.vmem %s542_s3, 16  ;;  %s2702_s11 = smov [#allocation11]  }
  0xbb   : > { %p2550_p4 = scmp.ne.s32.totalorder %s542_s3, %s2549_s23  ;;  %s2554_s5 = sshll.u32 %s2702_s11, 4  ;;  %s2555_s5 = int_to_ptr.vmem [resolvable:$false] %s2554_s5 }
  0xbc   : > { %s2556_s16 = scalar_lea.vmem %s2555_s5, 32  ;;  %p2557_p10 = scmp.lt.s32.totalorder %s542_s3, %s2555_s5 }
  0xbd   : > { %p2552_p3 = pnand %p2550_p4, %p2923_p6  ;;  %p2558_p11 = scmp.lt.s32.totalorder %s2556_s16, %s2549_s23 }
  0xbf   : > { %p2553_p5 = pneg %p2552_p3  ;;  %p2559_p9 = por %p2558_p11, %p2557_p10 }
  0xc1   : > { %p2560_p0 = pnand %p2559_p9, %p2553_p5 }
  0xc3   : > { %2563 = shalt.err (!%p2560_p0)
}
  0xc4   : > { %p3451_p12 = scmp.ne.s32.totalorder %s3439_s10, 0  ;;  %p3452_p8 = scmp.ne.s32.totalorder %s3443_s17, 0 }
  0xc5   : > { %s3067_s25 = sand.u32 (!%p3452_p8), 1, %s2670_s29   ;;  %p3453_p6 = scmp.ne.s32.totalorder (!%p3452_p8), %s3433_s21, 0 }
  0xc6   : > { %2254 = dma.hbm_to_vmem [thread:$0]  (!%p3451_p12), %s3043_s22, 16, %s542_s3, %s2965_s30  }
  0xc7   : > { %576 = sbr.rel (%p3452_p8) target bundleno = 3949 (0xf6d), region = 72  ;;  %s579_s28 = scalar_lea.sflag (!%p3452_p8), [#allocation4], %s3067_s25 }
  0xce   : > { %2637 = dma.done.wait (%p3453_p6), %s579_s28, 16  }
  0xcf   : > { %2639 = vsyncadd (%p3453_p6), %s579_s28, 4294967280  ;;  %s586_s10 = sand.u32 1, %s2843_s19  }
  0xd0   : > { %s587_s30 = scalar_lea.sflag [#allocation7], %s586_s10 }
  0xd1   : > { %2641 = dma.done.wait (%p3453_p6), %s587_s30, 32  }
  0xd2   : > { %2643 = vsyncadd (%p3453_p6), %s587_s30, 4294967264  ;;  %s2038_s22 = sshll.u32 %s3067_s25, 4  ;;  %s603_s3 = scalar_lea.sflag [#allocation10], %s586_s10 }
  0xd3   : > { %s3083_s9 = scalar_lea.vmem [#allocation9], %s2038_s22 }
  0xd4   : > { %2645 = dma.done.wait (%p3453_p6), %s603_s3, 272  }
  0xd5   : > { %2647 = vsyncadd (%p3453_p6), %s603_s3, 4294967024  ;;  %s3407_s19 = sand.u32 1, %s2658_s26   ;;  %p705_p9 = scmp.lt.s32.totalorder %s2682_s15, 1 }
  0xd6   : > { %s2039_s7 = sshll.u32 %s3407_s19, 4  ;;  %p710_p1 = scmp.lt.s32.totalorder %s2678_s14, 1 }
  0xd7   : > { %s706_s2 = scalar_select %p705_p9, %s2682_s15, 1 }
  0xd8   : > { %s3096_s13 = scalar_select %p710_p1, %s2678_s14, 1 }
  0xd9   : > { %s2087_s21 = sshll.u32 %s706_s2, 4  ;;  %s3454_s0 = sld [smem:[#allocation29_spill]] }
  0xda   : > { %s2088_s11 = sshll.u32 %s3096_s13, 4  ;;  %s3455_s1 = sld [smem:[#allocation30_spill]] }
  0xdb   : > { %s3457_s17 = sld [smem:[#allocation32_spill]]  ;;  %s2090_s4 = sshll.u32 %s3096_s13, 5 }
  0xdc   : > { %s3458_s8 = sld [smem:[#allocation38_spill]]  ;;  %s3460_s29 = sld [smem:[#allocation40_spill]] }
  0xdd   : > { %s3461_s3 = sld [smem:[#allocation41_spill]]  ;;  %s3133_s19 = scalar_lea.vmem [#allocation12], %s2039_s7 }
  0xde   : > { %p2048_p13 = scmp.ne.s32.totalorder %s2678_s14, 0 }
  0xdf   : > { %s709_s23 = scalar_lea.vmem %s3454_s0, %s2087_s21  ;;  %s3459_s0 = sld [smem:[#allocation39_spill]]  ;;  %vm744_vm0 = vcmask (!%p2048_p13), 261120  }
  0xe0   : > { %s714_s28 = scalar_lea.vmem %s3455_s1, %s2088_s11  ;;  %741 = sbr.rel (%p2048_p13) target bundleno = 231 (0xe7), region = 96  ;;  %v742_v0 = vld [vmem:[%s709_s23] sm:$0xff] (!%p2048_p13)  ;;  %v743_v1 = vld [vmem:[%s709_s23 + $0x8] sm:$0xff] (!%p2048_p13) }
  0xe1   : > { %s3112_s24 = scalar_lea.vmem %s3457_s17, %s2088_s11  ;;  %s614_s17 = scalar_lea.vmem [#allocation11], %s3067_s25  ;;  %745 = vst.msk [vmem:[#allocation2] sm:$0xff] (!%p2048_p13), %vm744_vm0, %v742_v0  ;;  %746 = vst.msk [vmem:[#allocation2 + $0x8] sm:$0xff] (!%p2048_p13), %vm744_vm0, %v743_v1 }
  0xe2   : > { %s3118_s20 = scalar_lea.vmem %s3458_s8, %s2090_s4  ;;  %s733_s10 = scalar_lea.vmem %s3460_s29, %s3096_s13 }
  0xe3   : > { %s736_s12 = scalar_lea.vmem %s3461_s3, %s3096_s13 }
  0xe5   : > { %s730_s5 = scalar_lea.vmem %s3459_s0, %s3096_s13 }
  0xe7 PF: > { %v2366_v2 = vld [vmem:[%s714_s28] sm:$0xff]   ;;  %v2703_v3 = vmov 0.0   ;;  %v2367_v4 = vld [vmem:[%s714_s28 + $0x8] sm:$0xff]   ;;  %vm2704_vm1 = vmmov 0   ;;  %vm773_vm2 = vcmask 261120   ;;  %s3462_s4 = sld [smem:[#allocation31_spill]] }
  0xe8   : > { %2127 = vmatprep.subr.bf16.mxu1 %v2703_v3  ;;  %2141 = vmatprep.subr.bf16.mxu0 %v2703_v3  ;;  %v3140_v5 = vld [vmem:[#allocation2] sm:$0xff]  ;;  %v3142_v6 = vld [vmem:[#allocation2 + $0x8] sm:$0xff]  ;;  %s2705_s8 = smov 120   ;;  %s2706_s29 = smov 96   ;;  %vm822_vm3 = vcmask 64512   ;;  %vm870_vm4 = vcmask 130048  }
  0xe9   : > { %2128 = vmatpush3.bf16.msra.mxu1 %v2366_v2  ;;  %2131 = vmatprep.mubr.msk.bf16.mxu1 %vm2704_vm1, %v2703_v3  ;;  %v749_v7 = vpack.c.bf16 %v3142_v6, %v3140_v5  ;;  %s2707_s7 = smov 88   ;;  %s2708_s23 = smov 56   ;;  %vm1069_vm5 = vcmask 1043456   ;;  %vm1671_vm6 = vcmask 523264  }
  0xea   : > { %2129 = vmatprep.subr.bf16.mxu1 %v2703_v3  ;;  %2143 = vmatprep.mubr.msk.bf16.mxu0 %vm2704_vm1, %v2703_v3  ;;  %s2709_s11 = smov 64   ;;  %s2710_s28 = smov 80  }
  0xeb   : > { %s2711_s3 = smov 112   ;;  %s2712_s2 = smov 72  }
  0xec   : > { %s2713_s21 = smov 48   ;;  %s2714_s27 = smov 104  }
  0xed   : > { %2130 = vmatpush3.bf16.msra.mxu1 %v2367_v4  ;;  %s3463_s6 = scalar_lea.vmem %s3462_s4, %s3096_s13  ;;  %s2715_s16 = smov 40  }
  0xee   : > { %2135 = vmatprep.subr.bf16.mxu1 %v2703_v3  ;;  %v2049_v8 = vld [vmem:[%s3463_s6] ss:$0 sm:$0xff]  ;;  %s3466_s30 = scalar_lea.vmem [#allocation8], %s3067_s25  ;;  %p2080_p2 = scmp.ne.s32.totalorder %s2678_s14, 1 }
  0xf0   : > { %2132 = vmatmul.mubr.msk.bf16.vlgmr.msra.gmra.mrb[0].mxu1 %vm773_vm2, %v749_v7 }
  0xf1   : > { %2137 = vmatprep.mubr.msk.bf16.mxu1 %vm2704_vm1, %v2703_v3 }
 0x1c3   : > { %v811_v9 = vpop.f32.mrb[0].mxu1 }
 0x1c4   : > { %v2133_v10 = vpop.f32.mrb[1].mxu1  ;;  %v812_v12 = vadd.f32 %v2049_v8, %v811_v9 }
 0x1c5   : > { %v814_v11 = vpop.f32.mrb[2].mxu1  ;;  %v1065_v10 = vld [vmem:[%s3112_s24 + $0x4] sm:$0xf] }
 0x1c6   : > { %v815_v13 = vadd.f32 %v2049_v8, %v814_v11  ;;  %v2134_v14 = vpop.f32.mrb[3].mxu1  ;;  %v942_v8 = vld [vmem:[%s3112_s24] sm:$0xf]  ;;  %v1071_v11 = vsel %vm1069_vm5, %v1065_v10, 0 }
 0x1c7   : > { %v1118_v9 = vsel %vm1069_vm5, %v942_v8, 0 }
 0x1c8   : > { %v3158_v15 = vpack.c.bf16 %v815_v13, %v812_v12 }
 0x1ca   : > { %943 = vrot.lane.b32.xlu1 %v3158_v15, %s2705_s8  ;;  %820 = vrot.lane.b32.xlu0 %v3158_v15, %s2706_s29 }
 0x1ce   : > { %945 = vrot.lane.b32.xlu0 %v3158_v15, %s2707_s7 }
 0x23c   : > { %v821_v16 = vpop.permute.xlu0 %820  ;;  %v944_v20 = vpop.permute.xlu1 %943 }
 0x23d   : > { %v827_v17 = vsel %vm822_vm3, %v821_v16, 0 }
 0x23e   : > { %2136 = vmatpush3.bf16.xpose.msra.mxu1 %v827_v17 }
 0x23f   : > { %2147 = vmatprep.subr.bf16.mxu1 %v2703_v3 }
 0x240   : > { %v946_v18 = vpop.permute.xlu0 %945 }
 0x241   : > { %v951_v19 = vsel %vm822_vm3, %v946_v18, 0 }
 0x245   : > { %2138 = vmatmul.mubr.msk.bf16.vlgmr.msra.gmra.mrb[4].mxu1 %vm822_vm3, %v3158_v15 }
 0x246   : > { %2148 = vmatpush3.bf16.xpose.msra.mxu1 %v951_v19  ;;  %2149 = vmatprep.mubr.msk.bf16.mxu1 %vm2704_vm1, %v2703_v3 }
 0x247   : > { %2159 = vmatprep.subr.bf16.mxu1 %v2703_v3 }
 0x24d   : > { %2150 = vmatmul.mubr.msk.bf16.vlgmr.msra.gmra.mrb[8].mxu1 %vm822_vm3, %v944_v20 }
 0x24e   : > { %2161 = vmatprep.mubr.msk.bf16.mxu1 %vm2704_vm1, %v2703_v3  ;;  %2160 = vmatpush3.bf16.msra.mxu1 %v1071_v11 }
 0x24f   : > { %2171 = vmatprep.subr.bf16.mxu1 %v2703_v3 }
 0x318   : > { %v863_v21 = vpop.f32.mrb[4].mxu1 }
 0x319   : > { %v2139_v22 = vpop.f32.mrb[5].mxu1  ;;  %v871_v23 = vsel %vm870_vm4, %v863_v21, -inf }
 0x31a   : > { %872 = vmax.xlane.f32.xlu1 %v871_v23  ;;  %v866_v24 = vpop.f32.mrb[6].mxu1 }
 0x31b   : > { %v2140_v25 = vpop.f32.mrb[7].mxu1  ;;  %v874_v26 = vsel %vm870_vm4, %v866_v24, -inf }
 0x31c   : > { %875 = vmax.xlane.f32.xlu0 %v874_v26 }
 0x320   : > { %v987_v27 = vpop.f32.mrb[8].mxu1 }
 0x321   : > { %v2151_v28 = vpop.f32.mrb[9].mxu1  ;;  %v994_v29 = vsel %vm870_vm4, %v987_v27, -inf }
 0x322   : > { %995 = vmax.xlane.f32.xlu0 %v994_v29  ;;  %v990_v30 = vpop.f32.mrb[10].mxu1 }
 0x323   : > { %v2152_v31 = vpop.f32.mrb[11].mxu1  ;;  %v997_v32 = vsel %vm870_vm4, %v990_v30, -inf }
 0x324   : > { %998 = vmax.xlane.f32.xlu1 %v997_v32 }
 0x3a7   : > { %v873_v33 = vpop.xlane.xlu1 %872 }
 0x3a8   : > { %v877_v34 = vsub.f32 %v863_v21, %v873_v33 }
 0x3a9   : > { %v876_v35 = vpop.xlane.xlu0 %875 }
 0x3aa   : > { %v879_v36 = vmul.f32 1.442695, %v877_v34  ;;  %v878_v37 = vsub.f32 %v866_v24, %v876_v35 }
 0x3ac   : > { %2374 = vpow2.f32 %v879_v36  ;;  %v881_v38 = vmul.f32 1.442695, %v878_v37 }
 0x3ae   : > { %2376 = vpow2.f32 %v881_v38 }
 0x3af   : > { %v996_v39 = vpop.xlane.xlu0 %995 }
 0x3b0   : > { %v1000_v40 = vsub.f32 %v987_v27, %v996_v39 }
 0x3b1   : > { %v999_v41 = vpop.xlane.xlu1 %998 }
 0x3b2   : > { %v1002_v42 = vmul.f32 1.442695, %v1000_v40  ;;  %v1001_v43 = vsub.f32 %v990_v30, %v999_v41 }
 0x3b4   : > { %2378 = vpow2.f32 %v1002_v42  ;;  %v1004_v44 = vmul.f32 1.442695, %v1001_v43 }
 0x3b6   : > { %v2375_v45 = vpop.eup %2374  ;;  %2380 = vpow2.f32 %v1004_v44 }
 0x3b7   : > { %v883_v46 = vsel %vm870_vm4, %v2375_v45, 0.0 }
 0x3b8   : > { %v2377_v47 = vpop.eup %2376  ;;  %884 = vadd.xlane.f32.xlu0 %v883_v46 }
 0x3b9   : > { %v886_v48 = vsel %vm870_vm4, %v2377_v47, 0.0 }
 0x3ba   : > { %887 = vadd.xlane.f32.xlu1 %v886_v48 }
 0x3be   : > { %v2379_v49 = vpop.eup %2378 }
 0x3bf   : > { %v1006_v50 = vsel %vm870_vm4, %v2379_v49, 0.0 }
 0x3c0   : > { %v2381_v51 = vpop.eup %2380  ;;  %1007 = vadd.xlane.f32.xlu0 %v1006_v50 }
 0x3c1   : > { %v1009_v52 = vsel %vm870_vm4, %v2381_v51, 0.0 }
 0x3c2   : > { %1010 = vadd.xlane.f32.xlu1 %v1009_v52 }
 0x3d3   : > { %1017 = vrot.lane.b32.xlu1 %v3158_v15, %s2708_s23 }
 0x3d6   : > { %894 = vrot.lane.b32.xlu0 %v3158_v15, %s2709_s11 }
 0x3d7   : > { %1163 = vrot.lane.b32.xlu1 %v3158_v15, %s2710_s28 }
 0x3da   : > { %1161 = vrot.lane.b32.xlu0 %v3158_v15, %s2711_s3 }
 0x445   : > { %v885_v53 = vpop.xlane.xlu0 %884 }
 0x446   : > { %2382 = vrcp.f32 %v885_v53 }
 0x447   : > { %v888_v54 = vpop.xlane.xlu1 %887 }
 0x448   : > { %2384 = vrcp.f32 %v888_v54 }
 0x44d   : > { %v1008_v55 = vpop.xlane.xlu0 %1007 }
 0x44e   : > { %2386 = vrcp.f32 %v1008_v55 }
 0x44f   : > { %v1011_v56 = vpop.xlane.xlu1 %1010 }
 0x450   : > { %v2383_v57 = vpop.eup %2382  ;;  %2388 = vrcp.f32 %v1011_v56 }
 0x451   : > { %v895_v58 = vpop.permute.xlu0 %894  ;;  %v891_v60 = vmul.f32 %v2383_v57, %v2375_v45 }
 0x452   : > { %v2385_v59 = vpop.eup %2384  ;;  %2142 = vmatpush3.bf16.msra.mxu0 %v895_v58 }
 0x453   : > { %2153 = vmatprep.subr.bf16.mxu0 %v2703_v3  ;;  %v892_v61 = vmul.f32 %v2385_v59, %v2377_v47  ;;  %v1018_v63 = vpop.permute.xlu1 %1017 }
 0x455   : > { %v893_v62 = vpack.c.bf16 %v892_v61, %v891_v60  ;;  %v1162_v25 = vpop.permute.xlu0 %1161 }
 0x457   : > { %2144 = vmatmul.mubr.msk.bf16.vlgmr.msra.gmra.mrb[0].mxu0 %vm870_vm4, %v893_v62  ;;  %v1164_v20 = vpop.permute.xlu1 %1163 }
 0x458   : > { %v2387_v0 = vpop.eup %2386  ;;  %2154 = vmatpush3.bf16.msra.mxu0 %v1018_v63  ;;  %2155 = vmatprep.mubr.msk.bf16.mxu0 %vm2704_vm1, %v2703_v3  ;;  %v1169_v24 = vsel %vm822_vm3, %v1164_v20, 0  ;;  %v1283_v63 = vld [vmem:[%s3112_s24 + $0x8] sm:$0xf] }
 0x459   : > { %2165 = vmatprep.subr.bf16.mxu0 %v2703_v3  ;;  %v1014_v2 = vmul.f32 %v2387_v0, %v2379_v49  ;;  %v1288_v0 = vsel %vm1069_vm5, %v1283_v63, 0 }
 0x45a   : > { %v2389_v1 = vpop.eup %2388 }
 0x45b   : > { %v1015_v4 = vmul.f32 %v2389_v1, %v2381_v51 }
 0x45d   : > { %v1016_v7 = vpack.c.bf16 %v1015_v4, %v1014_v2 }
 0x45f   : > { %2156 = vmatmul.mubr.msk.bf16.vlgmr.msra.gmra.mrb[4].mxu0 %vm870_vm4, %v1016_v7 }
 0x460   : > { %2167 = vmatprep.mubr.msk.bf16.mxu0 %vm2704_vm1, %v2703_v3  ;;  %2166 = vmatpush3.bf16.msra.mxu0 %v1118_v9 }
 0x461   : > { %2177 = vmatprep.subr.bf16.mxu0 %v2703_v3 }
 0x52a   : > { %v934_v12 = vpop.f32.mrb[0].mxu0 }
 0x52b   : > { %v2145_v13 = vpop.f32.mrb[1].mxu0 }
 0x52c   : > { %v937_v14 = vpop.f32.mrb[2].mxu0 }
 0x52d   : > { %v941_v16 = vpack.c.bf16 %v937_v14, %v934_v12  ;;  %v2146_v17 = vpop.f32.mrb[3].mxu0 }
 0x52f   : > { %2168 = vmatmul.mubr.msk.bf16.vlgmr.msra.gmra.mrb[8].mxu0 %vm822_vm3, %v941_v16 }
 0x530   : > { %2179 = vmatprep.mubr.msk.bf16.mxu0 %vm2704_vm1, %v2703_v3 }
 0x532   : > { %v1057_v18 = vpop.f32.mrb[4].mxu0 }
 0x533   : > { %v2157_v19 = vpop.f32.mrb[5].mxu0 }
 0x534   : > { %v1060_v21 = vpop.f32.mrb[6].mxu0 }
 0x535   : > { %v1064_v22 = vpack.c.bf16 %v1060_v21, %v1057_v18  ;;  %v2158_v23 = vpop.f32.mrb[7].mxu0 }
 0x537   : > { %2162 = vmatmul.mubr.msk.bf16.vlgmr.msra.gmra.mrb[12].mxu1 %vm822_vm3, %v1064_v22 }
 0x538   : > { %2172 = vmatpush3.bf16.xpose.msra.mxu1 %v1169_v24  ;;  %2173 = vmatprep.mubr.msk.bf16.mxu1 %vm2704_vm1, %v2703_v3 }
 0x539   : > { %2183 = vmatprep.subr.bf16.mxu1 %v2703_v3 }
 0x53f   : > { %2174 = vmatmul.mubr.msk.bf16.vlgmr.msra.gmra.mrb[16].mxu1 %vm822_vm3, %v1162_v25 }
 0x540   : > { %2185 = vmatprep.mubr.msk.bf16.mxu1 %vm2704_vm1, %v2703_v3  ;;  %2184 = vmatpush3.bf16.msra.mxu1 %v1288_v0 }
 0x541   : > { %2195 = vmatprep.subr.bf16.mxu1 %v2703_v3 }
 0x602   : > { %v1154_v26 = vpop.f32.mrb[8].mxu0 }
 0x603   : > { %v2169_v27 = vpop.f32.mrb[9].mxu0 }
 0x604   : > { %v1157_v28 = vpop.f32.mrb[10].mxu0 }
 0x605   : > { %v2170_v29 = vpop.f32.mrb[11].mxu0 }
 0x60a   : > { %v1107_v30 = vpop.f32.mrb[12].mxu1 }
 0x60b   : > { %v3211_v31 = vadd.f32 %v1154_v26, %v1107_v30  ;;  %v2163_v32 = vpop.f32.mrb[13].mxu1  ;;  %v1455_v26 = vld [vmem:[%s3112_s24 + $0xc] sm:$0xf]  ;;  %s3464_s24 = scalar_lea.vmem [#allocation3], %s3067_s25 }
 0x60c   : > { %v1110_v33 = vpop.f32.mrb[14].mxu1  ;;  %v1460_v27 = vsel %vm1069_vm5, %v1455_v26, 0 }
 0x60d   : > { %v3213_v34 = vadd.f32 %v1157_v28, %v1110_v33  ;;  %v2164_v35 = vpop.f32.mrb[15].mxu1 }
 0x612   : > { %v1205_v36 = vpop.f32.mrb[16].mxu1 }
 0x613   : > { %v2175_v37 = vpop.f32.mrb[17].mxu1  ;;  %v1212_v38 = vsel %vm870_vm4, %v1205_v36, -inf }
 0x614   : > { %1213 = vmax.xlane.f32.xlu1 %v1212_v38  ;;  %v1208_v39 = vpop.f32.mrb[18].mxu1 }
 0x615   : > { %v2176_v40 = vpop.f32.mrb[19].mxu1  ;;  %v1215_v41 = vsel %vm870_vm4, %v1208_v39, -inf }
 0x616   : > { %1216 = vmax.xlane.f32.xlu0 %v1215_v41 }
 0x6a1   : > { %v1214_v42 = vpop.xlane.xlu1 %1213 }
 0x6a2   : > { %v1218_v43 = vsub.f32 %v1205_v36, %v1214_v42 }
 0x6a3   : > { %v1217_v44 = vpop.xlane.xlu0 %1216 }
 0x6a4   : > { %v1220_v45 = vmul.f32 1.442695, %v1218_v43  ;;  %v1219_v46 = vsub.f32 %v1208_v39, %v1217_v44 }
 0x6a6   : > { %2390 = vpow2.f32 %v1220_v45  ;;  %v1222_v47 = vmul.f32 1.442695, %v1219_v46 }
 0x6a8   : > { %2392 = vpow2.f32 %v1222_v47  ;;  %v2065_v47 = vld [vmem:[%s3464_s24] ss:$0 sm:$0xff] }
 0x6b0   : > { %v2391_v48 = vpop.eup %2390 }
 0x6b1   : > { %v1224_v49 = vsel %vm870_vm4, %v2391_v48, 0.0 }
 0x6b2   : > { %v2393_v50 = vpop.eup %2392  ;;  %1225 = vadd.xlane.f32.xlu0 %v1224_v49 }
 0x6b3   : > { %v1227_v51 = vsel %vm870_vm4, %v2393_v50, 0.0 }
 0x6b4   : > { %1228 = vadd.xlane.f32.xlu1 %v1227_v51 }
 0x6c5   : > { %1335 = vrot.lane.b32.xlu1 %v3158_v15, %s2712_s2 }
 0x6c8   : > { %1235 = vrot.lane.b32.xlu0 %v3158_v15, %s2713_s21 }
 0x6c9   : > { %1333 = vrot.lane.b32.xlu1 %v3158_v15, %s2714_s27 }
 0x73f   : > { %v1226_v52 = vpop.xlane.xlu0 %1225 }
 0x740   : > { %2394 = vrcp.f32 %v1226_v52 }
 0x741   : > { %v1229_v53 = vpop.xlane.xlu1 %1228 }
 0x742   : > { %2396 = vrcp.f32 %v1229_v53 }
 0x743   : > { %v1236_v54 = vpop.permute.xlu0 %1235 }
 0x744   : > { %2178 = vmatpush3.bf16.msra.mxu0 %v1236_v54 }
 0x745   : > { %2189 = vmatprep.subr.bf16.mxu0 %v2703_v3  ;;  %v1336_v59 = vpop.permute.xlu1 %1335 }
 0x746   : > { %v1341_v61 = vsel %vm822_vm3, %v1336_v59, 0 }
 0x749   : > { %v1334_v62 = vpop.permute.xlu1 %1333 }
 0x74a   : > { %v2395_v55 = vpop.eup %2394 }
 0x74b   : > { %v1232_v57 = vmul.f32 %v2395_v55, %v2391_v48 }
 0x74c   : > { %v2397_v56 = vpop.eup %2396 }
 0x74d   : > { %v1233_v58 = vmul.f32 %v2397_v56, %v2393_v50 }
 0x74f   : > { %v1234_v60 = vpack.c.bf16 %v1233_v58, %v1232_v57 }
 0x751   : > { %2180 = vmatmul.mubr.msk.bf16.vlgmr.msra.gmra.mrb[12].mxu0 %vm870_vm4, %v1234_v60 }
 0x752   : > { %2190 = vmatpush3.bf16.xpose.msra.mxu0 %v1341_v61  ;;  %2191 = vmatprep.mubr.msk.bf16.mxu0 %vm2704_vm1, %v2703_v3 }
 0x753   : > { %2201 = vmatprep.subr.bf16.mxu0 %v2703_v3 }
 0x759   : > { %2192 = vmatmul.mubr.msk.bf16.vlgmr.msra.gmra.mrb[16].mxu0 %vm822_vm3, %v1334_v62 }
 0x75a   : > { %2203 = vmatprep.mubr.msk.bf16.mxu0 %vm2704_vm1, %v2703_v3  ;;  %2202 = vmatpush3.bf16.msra.mxu0 %v1460_v27  ;;  %v2372_v27 = vld [vmem:[%s3118_s20 + $0x10] sm:$0xff]  }
 0x75b   : > { %2215 = vmatprep.subr.bf16.mxu0 %v2703_v3 }
 0x824   : > { %v1275_v1 = vpop.f32.mrb[12].mxu0 }
 0x825   : > { %v2181_v2 = vpop.f32.mrb[13].mxu0 }
 0x826   : > { %v1278_v4 = vpop.f32.mrb[14].mxu0 }
 0x827   : > { %v1282_v7 = vpack.c.bf16 %v1278_v4, %v1275_v1  ;;  %v2182_v8 = vpop.f32.mrb[15].mxu0  ;;  %v2368_v4 = vld [vmem:[%s3083_s9] sm:$0xff]  }
 0x828   : > { %v2370_v8 = vld [vmem:[%s3118_s20] sm:$0xff]  }
 0x829   : > { %2186 = vmatmul.mubr.msk.bf16.vlgmr.msra.gmra.mrb[20].mxu1 %vm822_vm3, %v1282_v7  ;;  %v2369_v7 = vld [vmem:[%s3083_s9 + $0x8] sm:$0xff]   ;;  %s3465_s9 = scalar_lea.vmem [#allocation6], %s3067_s25 }
 0x82a   : > { %2197 = vmatprep.mubr.msk.bf16.mxu1 %vm2704_vm1, %v2703_v3 }
 0x82c   : > { %v1377_v9 = vpop.f32.mrb[16].mxu0 }
 0x82d   : > { %v2193_v10 = vpop.f32.mrb[17].mxu0  ;;  %v1384_v11 = vsel %vm870_vm4, %v1377_v9, -inf }
 0x82e   : > { %1385 = vmax.xlane.f32.xlu0 %v1384_v11  ;;  %v1380_v12 = vpop.f32.mrb[18].mxu0 }
 0x82f   : > { %v2194_v13 = vpop.f32.mrb[19].mxu0  ;;  %v1387_v14 = vsel %vm870_vm4, %v1380_v12, -inf }
 0x830   : > { %1388 = vmax.xlane.f32.xlu1 %v1387_v14 }
 0x841   : > { %1407 = vrot.lane.b32.xlu1 %v3158_v15, %s2715_s16 }
 0x8bb   : > { %v1386_v16 = vpop.xlane.xlu0 %1385 }
 0x8bc   : > { %v1390_v17 = vsub.f32 %v1377_v9, %v1386_v16  ;;  %v2371_v9 = vld [vmem:[%s3118_s20 + $0x8] sm:$0xff]  }
 0x8bd   : > { %v1389_v18 = vpop.xlane.xlu1 %1388 }
 0x8be   : > { %v1392_v19 = vmul.f32 1.442695, %v1390_v17  ;;  %v1391_v20 = vsub.f32 %v1380_v12, %v1389_v18 }
 0x8c0   : > { %2398 = vpow2.f32 %v1392_v19  ;;  %v1394_v21 = vmul.f32 1.442695, %v1391_v20  ;;  %v2066_v19 = vld [vmem:[%s3465_s9] ss:$0 sm:$0xff] }
 0x8c1   : > { %v1408_v22 = vpop.permute.xlu1 %1407 }
 0x8c2   : > { %2400 = vpow2.f32 %v1394_v21  ;;  %2196 = vmatpush3.bf16.msra.mxu1 %v1408_v22 }
 0x8c3   : > { %2207 = vmatprep.subr.bf16.mxu1 %v2703_v3 }
 0x8ca   : > { %v2399_v23 = vpop.eup %2398 }
 0x8cb   : > { %v1396_v24 = vsel %vm870_vm4, %v2399_v23, 0.0 }
 0x8cc   : > { %v2401_v25 = vpop.eup %2400  ;;  %1397 = vadd.xlane.f32.xlu0 %v1396_v24 }
 0x8cd   : > { %v1399_v15 = vsel %vm870_vm4, %v2401_v25, 0.0 }
 0x8d0   : > { %1400 = vadd.xlane.f32.xlu0 %v1399_v15 }
 0x8fc   : > { %v1324_v28 = vpop.f32.mrb[20].mxu1 }
 0x8fd   : > { %v1331_v29 = vadd.f32 %v1324_v28, %v3211_v31  ;;  %v2187_v30 = vpop.f32.mrb[21].mxu1  ;;  %v2373_v28 = vld [vmem:[%s3118_s20 + $0x18] sm:$0xff]  }
 0x8fe   : > { %v1327_v32 = vpop.f32.mrb[22].mxu1 }
 0x8ff   : > { %v1332_v33 = vadd.f32 %v1327_v32, %v3213_v34  ;;  %v2188_v35 = vpop.f32.mrb[23].mxu1 }
 0x959   : > { %v1398_v36 = vpop.xlane.xlu0 %1397 }
 0x95a   : > { %2402 = vrcp.f32 %v1398_v36 }
 0x95d   : > { %v1401_v37 = vpop.xlane.xlu0 %1400 }
 0x95e   : > { %2404 = vrcp.f32 %v1401_v37 }
 0x964   : > { %v2403_v38 = vpop.eup %2402 }
 0x965   : > { %v1404_v40 = vmul.f32 %v2403_v38, %v2399_v23  ;;  %v2067_v23 = vld [vmem:[%s3466_s30] ss:$0 sm:$0xff] }
 0x968   : > { %v2405_v39 = vpop.eup %2404 }
 0x969   : > { %v1405_v41 = vmul.f32 %v2405_v39, %v2401_v25 }
 0x96b   : > { %v1406_v42 = vpack.c.bf16 %v1405_v41, %v1404_v40 }
 0x96d   : > { %2198 = vmatmul.mubr.msk.bf16.vlgmr.msra.gmra.mrb[24].mxu1 %vm870_vm4, %v1406_v42 }
 0x96e   : > { %2211 = vmatprep.mubr.msk.bf16.mxu1 %vm2704_vm1, %v2703_v3  ;;  %2208 = vmatpush3.bf16.msra.mxu1 %v2368_v4 }
 0x96f   : > { %2209 = vmatprep.subr.bf16.mxu1 %v2703_v3 }
 0x972   : > { %2210 = vmatpush3.bf16.msra.mxu1 %v2369_v7 }
 0xa40   : > { %v1447_v31 = vpop.f32.mrb[24].mxu1 }
 0xa41   : > { %v2199_v43 = vpop.f32.mrb[25].mxu1 }
 0xa42   : > { %v1450_v44 = vpop.f32.mrb[26].mxu1 }
 0xa43   : > { %v1454_v34 = vpack.c.bf16 %v1450_v44, %v1447_v31  ;;  %v2200_v45 = vpop.f32.mrb[27].mxu1 }
 0xa45   : > { %2204 = vmatmul.mubr.msk.bf16.vlgmr.msra.gmra.mrb[20].mxu0 %vm822_vm3, %v1454_v34 }
 0xa46   : > { %2223 = vmatprep.mubr.msk.bf16.mxu0 %vm2704_vm1, %v2703_v3  ;;  %2216 = vmatpush3.bf16.msra.mxu0 %v2370_v8 }
 0xa47   : > { %2217 = vmatprep.subr.bf16.mxu0 %v2703_v3 }
 0xa4a   : > { %2218 = vmatpush3.bf16.msra.mxu0 %v2371_v9 }
 0xa4b   : > { %2219 = vmatprep.subr.bf16.mxu0 %v2703_v3 }
 0xa4e   : > { %2220 = vmatpush3.bf16.msra.mxu0 %v2372_v27 }
 0xa4f   : > { %2221 = vmatprep.subr.bf16.mxu0 %v2703_v3  ;;  %v2072_v3 = vld [vmem:[%s730_s5] ss:$0 sm:$0xff] }
 0xa52   : > { %2222 = vmatpush3.bf16.msra.mxu0 %v2373_v28 }
 0xb18   : > { %v1496_v46 = vpop.f32.mrb[20].mxu0 }
 0xb19   : > { %v1503_v48 = vadd.f32 %v1496_v46, %v1331_v29  ;;  %v2205_v49 = vpop.f32.mrb[21].mxu0  ;;  %v2068_v29 = vld [vmem:[%s614_s17] ss:$0 sm:$0xff] }
 0xb1a   : > { %v1499_v50 = vpop.f32.mrb[22].mxu0 }
 0xb1b   : > { %v1512_v51 = vadd.f32 %v2065_v47, %v1503_v48  ;;  %v1504_v52 = vadd.f32 %v1499_v50, %v1332_v33  ;;  %v2206_v53 = vpop.f32.mrb[23].mxu0 }
 0xb1d   : > { %v1513_v54 = vadd.f32 %v2065_v47, %v1504_v52  ;;  %v1514_v55 = vadd.f32 %v1512_v51, %v3140_v5 }
 0xb1f   : > { %v1518_v56 = vsel %vm773_vm2, %v1514_v55, 0.0  ;;  %v1515_v57 = vadd.f32 %v1513_v54, %v3142_v6 }
 0xb20   : > { %1519 = vadd.xlane.f32.xlu0 %v1518_v56 }
 0xb21   : > { %v1521_v58 = vsel %vm773_vm2, %v1515_v57, 0.0 }
 0xb24   : > { %1522 = vadd.xlane.f32.xlu0 %v1521_v58 }
 0xbad   : > { %v1520_v59 = vpop.xlane.xlu0 %1519 }
 0xbae   : > { %v1525_v60 = vmul.f32 0.03125, %v1520_v59 }
 0xbb0   : > { %v1527_v61 = vsub.f32 %v1514_v55, %v1525_v60 }
 0xbb1   : > { %v1523_v62 = vpop.xlane.xlu0 %1522 }
 0xbb2   : > { %v1526_v63 = vmul.f32 0.03125, %v1523_v62  ;;  %v1529_v0 = vmul.f32 %v1527_v61, %v1527_v61 }
 0xbb4   : > { %v1528_v1 = vsub.f32 %v1515_v57, %v1526_v63  ;;  %v1531_v5 = vsel %vm773_vm2, %v1529_v0, 0.0 }
 0xbb5   : > { %1532 = vadd.xlane.f32.xlu0 %v1531_v5  ;;  %v2078_v5 = vld [vmem:[%s733_s10] ss:$0 sm:$0xff] }
 0xbb6   : > { %v1530_v2 = vmul.f32 %v1528_v1, %v1528_v1 }
 0xbb8   : > { %v1534_v6 = vsel %vm773_vm2, %v1530_v2, 0.0 }
 0xbb9   : > { %1535 = vadd.xlane.f32.xlu0 %v1534_v6  ;;  %v2079_v6 = vld [vmem:[%s736_s12] ss:$0 sm:$0xff] }
 0xc42   : > { %v1533_v10 = vpop.xlane.xlu0 %1532 }
 0xc43   : > { %v1537_v11 = vmul.f32 0.03125, %v1533_v10 }
 0xc45   : > { %v1539_v12 = vadd.f32 1e-05, %v1537_v11 }
 0xc46   : > { %v1536_v13 = vpop.xlane.xlu0 %1535 }
 0xc47   : > { %2406 = vrsqrt.f32 %v1539_v12  ;;  %v1538_v14 = vmul.f32 0.03125, %v1536_v13 }
 0xc49   : > { %v1540_v16 = vadd.f32 1e-05, %v1538_v14 }
 0xc4b   : > { %2408 = vrsqrt.f32 %v1540_v16 }
 0xc51   : > { %v2407_v17 = vpop.eup %2406 }
 0xc52   : > { %v1543_v18 = vmul.f32 %v2407_v17, %v1527_v61 }
 0xc54   : > { %v1551_v21 = vmul.f32 %v2066_v19, %v1543_v18 }
 0xc55   : > { %v2409_v20 = vpop.eup %2408 }
 0xc56   : > { %v1544_v22 = vmul.f32 %v2409_v20, %v1528_v1  ;;  %v1559_v25 = vadd.f32 %v2067_v23, %v1551_v21 }
 0xc58   : > { %v1552_v24 = vmul.f32 %v2066_v19, %v1544_v22 }
 0xc5a   : > { %v1560_v15 = vadd.f32 %v2067_v23, %v1552_v24 }
 0xc5c   : > { %v1561_v26 = vpack.c.bf16 %v1560_v15, %v1559_v25 }
 0xc5e   : > { %2212 = vmatmul.mubr.msk.bf16.vlgmr.msra.gmra.mrb[28].mxu1 %vm773_vm2, %v1561_v26 }
 0xd31   : > { %v1622_v30 = vpop.f32.mrb[28].mxu1 }
 0xd32   : > { %v1623_v32 = vadd.f32 %v2068_v29, %v1622_v30  ;;  %v2213_v33 = vpop.f32.mrb[29].mxu1 }
 0xd33   : > { %v1625_v35 = vpop.f32.mrb[30].mxu1 }
 0xd34   : > { %v1626_v36 = vadd.f32 %v2068_v29, %v1625_v35  ;;  %v2214_v37 = vpop.f32.mrb[31].mxu1  ;;  %v1629_v38 = vmax.f32 %v1623_v32, 0.0 }
 0xd36   : > { %v1630_v39 = vmax.f32 %v1626_v36, 0.0 }
 0xd38   : > { %v1631_v40 = vpack.c.bf16 %v1630_v39, %v1629_v38 }
 0xd3a   : > { %2224 = vmatmul.mubr.msk.bf16.vlgmr.msra.gmra.mrb[24].mxu0 %vm1671_vm6, %v1631_v40 }
 0xe0d   : > { %v1709_v41 = vpop.f32.mrb[24].mxu0 }
 0xe0e   : > { %v1710_v42 = vadd.f32 %v2072_v3, %v1709_v41  ;;  %v2225_v31 = vpop.f32.mrb[25].mxu0 }
 0xe0f   : > { %v1712_v43 = vpop.f32.mrb[26].mxu0 }
 0xe10   : > { %v1713_v44 = vadd.f32 %v2072_v3, %v1712_v43  ;;  %v2226_v34 = vpop.f32.mrb[27].mxu0  ;;  %v1716_v45 = vadd.f32 %v1710_v42, %v1559_v25 }
 0xe12   : > { %v1720_v46 = vsel %vm773_vm2, %v1716_v45, 0.0  ;;  %v1717_v47 = vadd.f32 %v1713_v44, %v1560_v15 }
 0xe13   : > { %1721 = vadd.xlane.f32.xlu1 %v1720_v46 }
 0xe14   : > { %v1723_v48 = vsel %vm773_vm2, %v1717_v47, 0.0 }
 0xe15   : > { %1724 = vadd.xlane.f32.xlu0 %v1723_v48 }
 0xea0   : > { %v1722_v49 = vpop.xlane.xlu1 %1721 }
 0xea1   : > { %v1726_v50 = vmul.f32 0.03125, %v1722_v49 }
 0xea2   : > { %v1725_v51 = vpop.xlane.xlu0 %1724 }
 0xea3   : > { %v1728_v52 = vsub.f32 %v1716_v45, %v1726_v50  ;;  %v1727_v53 = vmul.f32 0.03125, %v1725_v51 }
 0xea5   : > { %v1729_v54 = vsub.f32 %v1717_v47, %v1727_v53  ;;  %v1730_v55 = vmul.f32 %v1728_v52, %v1728_v52 }
 0xea7   : > { %v1732_v56 = vsel %vm773_vm2, %v1730_v55, 0.0  ;;  %v1731_v57 = vmul.f32 %v1729_v54, %v1729_v54 }
 0xea8   : > { %1733 = vadd.xlane.f32.xlu0 %v1732_v56 }
 0xea9   : > { %v1735_v58 = vsel %vm773_vm2, %v1731_v57, 0.0 }
 0xeac   : > { %1736 = vadd.xlane.f32.xlu0 %v1735_v58 }
 0xf35   : > { %v1734_v59 = vpop.xlane.xlu0 %1733 }
 0xf36   : > { %v1738_v60 = vmul.f32 0.03125, %v1734_v59 }
 0xf38   : > { %v1740_v61 = vadd.f32 1e-05, %v1738_v60 }
 0xf39   : > { %v1737_v62 = vpop.xlane.xlu0 %1736 }
 0xf3a   : > { %2410 = vrsqrt.f32 %v1740_v61  ;;  %v1739_v63 = vmul.f32 0.03125, %v1737_v62 }
 0xf3c   : > { %v1741_v0 = vadd.f32 1e-05, %v1739_v63 }
 0xf3e   : > { %2412 = vrsqrt.f32 %v1741_v0 }
 0xf44   : > { %v2411_v1 = vpop.eup %2410 }
 0xf45   : > { %v1744_v2 = vmul.f32 %v2411_v1, %v1728_v52 }
 0xf47   : > { %v1752_v4 = vmul.f32 %v2078_v5, %v1744_v2 }
 0xf48   : > { %v2413_v7 = vpop.eup %2412 }
 0xf49   : > { %v1760_v8 = vadd.f32 %v2079_v6, %v1752_v4  ;;  %v1745_v9 = vmul.f32 %v2413_v7, %v1729_v54  ;;  %1767 = sbr.rel (%p2080_p2) target bundleno = 3920 (0xf50), region = 100 }
 0xf4b   : > { %1762 = vst.msk [vmem:[#allocation2] sm:$0xff] %vm773_vm2, %v1760_v8  ;;  %v1753_v10 = vmul.f32 %v2078_v5, %v1745_v9  ;;  %1768 = vst.msk [vmem:[%s3133_s19] sm:$0xff] (!%p2080_p2), %vm773_vm2, %v1760_v8 }
 0xf4d   : > { %v1761_v11 = vadd.f32 %v2079_v6, %v1753_v10 }
 0xf4f   : > { %1763 = vst.msk [vmem:[#allocation2 + $0x8] sm:$0xff] %vm773_vm2, %v1761_v11  ;;  %1769 = vst.msk [vmem:[%s3133_s19 + $0x8] sm:$0xff] (!%p2080_p2), %vm773_vm2, %v1761_v11 }
 0xf50 PF: > { %s3470_s13 = sld [smem:[#allocation27_spill]]  ;;  %s2091_s10 = sshll.u32 %s2682_s15, 8 }
 0xf51   : > { %s3471_s29 = sld [smem:[#allocation42_spill]]  ;;  %s1784_s11 = sshll.u32 %s3133_s19, 4  ;;  %s3312_s11 = int_to_ptr.vmem [resolvable:$true] %s1784_s11 }
 0xf52   : > { %s3473_s14 = sand.u32 1, %s2658_s26   ;;  %s2564_s3 = scalar_lea.vmem %s3312_s11, 256 }
 0xf53   : > { %s3316_s28 = scalar_lea.sflag [#allocation5], %s3473_s14  ;;  %p2565_p7 = scmp.ne.s32.totalorder %s3312_s11, %s2564_s3 }
 0xf54   : > { %s2716_s15 = smov [#allocation12]  }
 0xf55   : > { %s2568_s2 = sshll.u32 %s2716_s15, 4  ;;  %s2569_s2 = int_to_ptr.vmem [resolvable:$false] %s2568_s2 }
 0xf56   : > { %p3474_p4 = scmp.ne.s32.totalorder %s3470_s13, 0  ;;  %s2570_s21 = scalar_lea.vmem %s2569_s2, 512 }
 0xf57   : > { %s3472_s7 = smov %s3471_s29  ;;  %s3309_s23 = scalar_lea.hbm %s3471_s29, %s2091_s10 }
 0xf58   : > { %p2566_p3 = pnand %p2565_p7, %p3474_p4  ;;  %p2571_p10 = scmp.lt.s32.totalorder %s3312_s11, %s2569_s2 }
 0xf59   : > { %p2572_p11 = scmp.lt.s32.totalorder %s2570_s21, %s2564_s3 }
 0xf5a   : > { %p2567_p5 = pneg %p2566_p3 }
 0xf5b   : > { %p2573_p0 = por %p2572_p11, %p2571_p10 }
 0xf5d   : > { %p2574_p12 = pnand %p2573_p0, %p2567_p5 }
 0xf5f   : > { %2577 = shalt.err (!%p2574_p12)
}
 0xf60   : > { %s2578_s19 = scalar_lea.hbm %s3309_s23, 256  ;;  %s2582_s24 = scalar_lea.hbm %s3472_s7, 512 }
 0xf61   : > { %p2579_p8 = scmp.ne.s32.totalorder %s3309_s23, %s2578_s19  ;;  %p2583_p1 = scmp.lt.u32.totalorder %s3309_s23, %s3472_s7 }
 0xf62   : > { %p2584_p13 = scmp.lt.u32.totalorder %s2582_s24, %s2578_s19  ;;  %p2586_p7 = scmp.lt.u32.totalorder %s2578_s19, %s3309_s23 }
 0xf63   : > { %p2580_p6 = pnand %p2579_p8, %p3474_p4 }
 0xf64   : > { %p2585_p2 = por %p2584_p13, %p2583_p1 }
 0xf65   : > { %p2581_p9 = pneg %p2580_p6 }
 0xf66   : > { %p2587_p3 = por %p2586_p7, %p2585_p2 }
 0xf68   : > { %p2588_p5 = pnand %p2587_p3, %p2581_p9 }
 0xf6a   : > { %2591 = shalt.err (!%p2588_p5)
}
 0xf6b   : > { %s2717_s22 = smov 128   ;;  %s2718_s0 = smov 8  }
 0xf6c   : > { %2237 = dma.vmem_to_hbm [thread:$0]  (%p3474_p4), %s3312_s11, 256, %s3309_s23, %s3316_s28, %s2717_s22, %s2717_s22, %s2718_s0  }
 0xf6d PF: > { %s3475_s1 = sld [smem:[#allocation17_spill]]  ;;  %s3476_s25 = sld [smem:[#allocation28_spill]] }
 0xf6e   : > { %p2260_p10 = scmp.ge.s32.totalorder %s2694_s18, 2 }
 0xf73   : > { %s1799_s20 = sand.u32 1, %s3475_s1   ;;  %p3477_p11 = scmp.ne.s32.totalorder %s3476_s25, 0 }
 0xf74   : > { %s1800_s5 = scalar_lea.sflag [#allocation5], %s1799_s20 }
 0xf75   : > { %p2256_p0 = pnand %p2260_p10, %p3477_p11 }
 0xf77   : > { %2649 = dma.done.wait (!%p2256_p0), %s1800_s5, 256  }
 0xf78   : > { %2651 = vsyncadd (!%p2256_p0), %s1800_s5, 4294967040  ;;  %s35_s18 = sadd.s32 1, %s2694_s18   ;;  %s3478_s17 = sld [smem:[#allocation18_spill]] }
 0xf79   : > { %p32_p12 = scmp.ge.s32.totalorder %s35_s18, 6   ;;  %s3479_s27 = sld [smem:[#allocation26_spill]] }
 0xf7a   : > { %s3480_s28 = sld [smem:[#allocation19_spill]]  ;;  %s3481_s29 = sld [smem:[#allocation20_spill]] }
 0xf7b   : > { %s3482_s30 = sld [smem:[#allocation25_spill]]  ;;  %s3483_s14 = sld [smem:[#allocation21_spill]] }
 0xf7c   : > { %s3484_s15 = sld [smem:[#allocation22_spill]]  ;;  %s3485_s16 = sld [smem:[#allocation23_spill]] }
 0xf7d   : > { %s3486_s4 = sld [smem:[#allocation24_spill]]  ;;  %s3487_s25 = smov %s2658_s26 }
 0xf7e   : > { %s3488_s26 = smov %s3478_s17  ;;  %34 = sbr.rel (!%p32_p12) target bundleno = 28 (0x1c), region = 197 }
 0xf83   : > { %s3489_s17 = smov %s3486_s4 }
 0xf85   :  { %1805 = vsyncpa [#allocation4], 1 }
 0xf86   :  { %1807 = vsyncpa [#allocation4 + $0x1], 1 }
 0xf87   :  { %1808 = vsyncpa [#allocation7], 1 }
 0xf88   :  { %1810 = vsyncpa [#allocation7 + $0x1], 1 }
 0xf89   :  { %1811 = vsyncpa [#allocation10], 1 }
 0xf8a   :  { %1813 = vsyncpa [#allocation10 + $0x1], 1 }
 0xf8b   :  { %1814 = vsyncpa [#allocation5], 1 }
 0xf8c   :  { %1816 = vsyncpa [#allocation5 + $0x1], 1 }

</bundles_post_ra>
